<compile_context>
chip_gen: v7x
topology: tpu7x:2x2x1
jax: 0.10.0
libtpu: 0.0.40
codegen_flags: <defaults>
</compile_context>

<pallas_src>
import math

import jax
import jax.numpy as jnp
import numpy as np
from jax.experimental import pallas as pl
from jax.experimental.pallas import tpu as pltpu


def _pe_kernel(sb_ref, o_ref):
    """One (tile_rows, lane_w) tile of the PE table in flattened layout.

    Flat element (abs_row, col) encodes position p = abs_row*per_row + col//d_model
    and feature j = col % d_model.  The table value sin/cos(p * inv_freq(j)) is
    folded into a single sin:
        pe = sin(abs_row * scale[col] + bias[col])
        scale[col] = per_row * inv_freq(j)
        bias[col]  = (col // d_model) * inv_freq(j) + (0 or pi/2 for odd j)
    sb_ref row 0 is `scale`, row 1 is `bias` (host precomputed, grid-invariant).
    """
    rows, lanes = o_ref.shape
    r0 = (pl.program_id(0) * rows).astype(jnp.float32)
    abs_row = jax.lax.broadcasted_iota(jnp.int32, (rows, lanes), 0).astype(jnp.float32) + r0
    scale = sb_ref[0:1, :]
    bias = sb_ref[1:2, :]
    o_ref[...] = jnp.sin(abs_row * scale + bias)


def _round_up(x: int, m: int) -> int:
    return ((x + m - 1) // m) * m


def _choose_tile_rows(rows_needed: int, lane_w: int,
                      max_bytes: int = 6 << 20,
                      force_split_bytes: int = 512 << 10) -> int:
    """Row-tile choice: multiple of 8, f32 tile <= max_bytes (2x double-buffered
    stays under every generation's default scoped VMEM), and for non-trivial
    tables at most half the rows so the 'parallel' axis gets >= 2 grid steps
    (v7x megacore).  The wrapper pads rows up to a multiple of the tile, so no
    full-array fallback is ever needed."""
    row_bytes = lane_w * 4
    cap = max(8, (max_bytes // row_bytes) // 8 * 8)
    tile = min(_round_up(rows_needed, 8), cap)
    if rows_needed * row_bytes > force_split_bytes:
        half = max(8, _round_up((rows_needed + 1) // 2, 8))
        tile = min(tile, half)
    return tile


def make_positional_embedding_table(d_model: int, max_len: int = 512,
                                    tile_cap_bytes: int = 6 << 20) -> jax.Array:
    """Build the (max_len, d_model) sinusoidal PE table with a Pallas kernel."""
    assert d_model % 2 == 0, "d_model must be even (interleaved sin/cos)"

    # Lane-dense flattening: lane_w = lcm(d_model, 128) -> every output row is a
    # whole number of positions AND a multiple of 128 lanes (unmasked full vst).
    per_row = 128 // math.gcd(d_model, 128)      # positions per flattened row
    lane_w = per_row * d_model                   # lcm(d_model, 128)
    rows_needed = -(-max_len // per_row)         # ceil

    tile_rows = _choose_tile_rows(rows_needed, lane_w, tile_cap_bytes)
    padded_rows = _round_up(rows_needed, tile_rows)
    grid = (padded_rows // tile_rows,)

    # Host-side precompute of per-lane scale/bias (exp, j%2 and the sin/cos
    # select are fully hoisted out of the kernel; matches numpy/torch exactly).
    cols = np.arange(lane_w)
    j = cols % d_model
    even_j = (j - (j % 2)).astype(np.float32)
    inv_freq = np.exp(even_j * (-math.log(10000.0) / d_model)).astype(np.float32)
    phase = np.where(j % 2 == 0, 0.0, 0.5 * math.pi).astype(np.float32)
    pos_off = (cols // d_model).astype(np.float32)
    scale = (per_row * inv_freq).astype(np.float32)
    bias = (pos_off * inv_freq + phase).astype(np.float32)
    sb = jnp.asarray(np.stack([scale, bias], axis=0))    # (2, lane_w)

    flat = pl.pallas_call(
        _pe_kernel,
        out_shape=jax.ShapeDtypeStruct((padded_rows, lane_w), jnp.float32),
        grid=grid,
        in_specs=[pl.BlockSpec((2, lane_w), lambda i: (0, 0))],   # grid-invariant
        out_specs=pl.BlockSpec((tile_rows, lane_w), lambda i: (i, 0)),
        compiler_params=pltpu.CompilerParams(
            dimension_semantics=("parallel",)),
    )(sb)

    # Un-flatten and drop the padding positions.
    return flat.reshape(padded_rows * per_row, d_model)[:max_len]


class PositionalEmbedding:
    """JAX/Pallas equivalent of the PyTorch PositionalEmbedding module."""

    def __init__(self, d_model: int, max_len: int = 512):
        # (1, max_len, d_model) buffer computed once at init (like register_buffer).
        self.pe = make_positional_embedding_table(d_model, max_len)[None]

    def __call__(self, x: jax.Array) -> jax.Array:
        # forward: return self.pe[:, :x.size(1)]
        return self.pe[:, : x.shape[1]]


def _numpy_reference(d_model: int, max_len: int) -> np.ndarray:
    pe = np.zeros((max_len, d_model), dtype=np.float32)
    position = np.arange(0, max_len, dtype=np.float32)[:, None]
    div_term = np.exp(np.arange(0, d_model, 2, dtype=np.float32)
                      * -(math.log(10000.0) / d_model))
    pe[:, 0::2] = np.sin(position * div_term)
    pe[:, 1::2] = np.cos(position * div_term)
    return pe[None]


if __name__ == "__main__":
    d_model = 32
    max_len = 512
    batch, seq_len = 2, 8

    key = jax.random.PRNGKey(0)
    x = jax.random.normal(key, (batch, seq_len, d_model), dtype=jnp.float32)

    module = PositionalEmbedding(d_model, max_len=max_len)
    out = module(x)
    out = jax.block_until_ready(out)

    assert out.shape == (1, seq_len, d_model), out.shape
    assert out.dtype == jnp.float32

    ref = _numpy_reference(d_model, max_len)
    # Tight check on the (small-argument) forward slice.
    np.testing.assert_allclose(np.asarray(out), ref[:, :seq_len],
                               rtol=1e-5, atol=2e-5)
    # Full-table check (pi/2 fold adds ~max_len * 2^-24 rad of argument rounding
    # on the cos columns, so use a looser atol here).
    np.testing.assert_allclose(np.asarray(module.pe), ref, rtol=1e-4, atol=1e-4)

    # d_model = 48 previously fell back to masked stores; now lane_w = lcm(48,128)
    # = 384, with max_len = 100 exercising the row-padding + slice path.
    tbl48 = jax.block_until_ready(make_positional_embedding_table(48, max_len=100))
    np.testing.assert_allclose(np.asarray(tbl48), _numpy_reference(48, 100)[0],
                               rtol=1e-4, atol=1e-4)

    # Small tile cap to force a multi-step grid (exercises the per-step r0 offset
    # and the >=2-step megacore path).
    tbl64 = jax.block_until_ready(
        make_positional_embedding_table(64, max_len=512, tile_cap_bytes=64 << 10))
    np.testing.assert_allclose(np.asarray(tbl64), _numpy_reference(64, 512)[0],
                               rtol=1e-4, atol=1e-4)

    print("KERNEL_OK")
</pallas_src>

<mosaic_0001>
module attributes {stable_mosaic.version = 11 : i64} {
  func.func @_pe_kernel(%arg0: i32, %arg1: memref<2x128xf32, #tpu.memory_space<vmem>>, %arg2: memref<128x128xf32, #tpu.memory_space<vmem>>) attributes {dimension_semantics = [#tpu.dimension_semantics<parallel>], iteration_bounds = array<i64: 1>, scalar_prefetch = 0 : i64, scratch_operands = 0 : i64, tpu.core_type = #tpu.core_type<tc>, window_params = [{pipeline_mode = #tpu.pipeline_mode<synchronous>, transform_indices = @transform_0, window_bounds = array<i64: 2, 128>}, {transform_indices = @transform_1, window_bounds = array<i64: 128, 128>}]} {
    %c128_i32 = arith.constant 128 : i32
    %0 = arith.muli %arg0, %c128_i32 : i32
    %1 = arith.sitofp %0 : i32 to f32
    %2 = tpu.iota {dimensions = array<i32: 0>} : vector<128x128xi32>
    %3 = arith.sitofp %2 : vector<128x128xi32> to vector<128x128xf32>
    %4 = vector.broadcast %1 : f32 to vector<128x128xf32>
    %5 = arith.addf %3, %4 : vector<128x128xf32>
    %c0 = arith.constant 0 : index
    %c0_0 = arith.constant 0 : index
    %6 = vector.load %arg1[%c0, %c0_0] : memref<2x128xf32, #tpu.memory_space<vmem>>, vector<1x128xf32>
    %c1 = arith.constant 1 : index
    %c0_1 = arith.constant 0 : index
    %7 = vector.load %arg1[%c1, %c0_1] : memref<2x128xf32, #tpu.memory_space<vmem>>, vector<1x128xf32>
    %8 = vector.broadcast %6 : vector<1x128xf32> to vector<128x128xf32>
    %9 = arith.mulf %5, %8 : vector<128x128xf32>
    %10 = vector.broadcast %7 : vector<1x128xf32> to vector<128x128xf32>
    %11 = arith.addf %9, %10 : vector<128x128xf32>
    %12 = math.sin %11 : vector<128x128xf32>
    %c0_2 = arith.constant 0 : index
    %c0_3 = arith.constant 0 : index
    %13 = vector.load %arg2[%c0_2, %c0_3] : memref<128x128xf32, #tpu.memory_space<vmem>>, vector<128x128xf32>
    tpu.vector_store %arg2[%c0_2, %c0_3], %12 {strides = array<i32>} : memref<128x128xf32, #tpu.memory_space<vmem>>, vector<128x128xf32>,
    return
  }
  func.func @transform_0(%arg0: i32) -> (i32, i32) {
    %c0_i32 = arith.constant 0 : i32
    %c0_i32_0 = arith.constant 0 : i32
    %c0_i32_1 = arith.constant 0 : i32
    return %c0_i32, %c0_i32_0 : i32, i32
  }
  func.func @transform_1(%arg0: i32) -> (i32, i32) {
    %c0_i32 = arith.constant 0 : i32
    %c0_i32_0 = arith.constant 0 : i32
    return %arg0, %c0_i32 : i32, i32
  }
}

</mosaic_0001>

<bundles_post_ra>
// kernel: tpu_custom_call.1
= control target key start
LH: loop header
LB: loop body
LE: loop exit
PB: predicated region body
PF: predicated region fallthrough
CT: control target
= control target key end

     0   :  { %6 = vsyncpa [#allocation3], 0  ;;  %s3396_s0 = inlined_call_operand.hbm [shape: f32[2,128], index: 0, kind: input, shape index: {}]   ;;  %s3397_s1 = inlined_call_operand.hbm [shape: f32[128,128], index: 1, kind: output, shape index: {}]  }
   0x1   :  { %7 = vsyncpa [#allocation4], 0  ;;  %s2064_s6 = smov [#allocation2]   ;;  %s2016_s10 = scalar_lea.hbm %s3396_s0, 32 }
   0x2   :  { %s14_s7 = sshll.u32 %s2064_s6, 4  ;;  %p2017_p0 = scmp.ne.s32.totalorder %s3396_s0, %s2016_s10  ;;  %s15_s7 = int_to_ptr.vmem [resolvable:$true] %s14_s7 }
   0x3   :  { %p2020_p1 = scmp.lt.u32.totalorder %s2016_s10, %s3396_s0 }
   0x5   :  { %p2022_p2 = pnand %p2020_p1, %p2017_p0 }
   0x7   :  { %2025 = shalt.err (!%p2022_p2)
}
   0x8   :  { %s2026_s15 = scalar_lea.vmem %s15_s7, 32  ;;  %p2031_p4 = scmp.lt.s32.totalorder %s15_s7, %s15_s7 }
   0x9   :  { %p2027_p3 = scmp.ne.s32.totalorder %s15_s7, %s2026_s15  ;;  %p2032_p5 = scmp.lt.s32.totalorder %s2026_s15, %s2026_s15 }
   0xb   :  { %p2033_p6 = por %p2032_p5, %p2031_p4 }
   0xd   :  { %p2034_p7 = pnand %p2033_p6, %p2027_p3 }
   0xf   :  { %2037 = shalt.err (!%p2034_p7)
}
  0x10   :  { %17 = dma.hbm_to_vmem [thread:$0]  %s3396_s0, 32, %s15_s7, [#allocation3]  }
  0x11   :  { %2060 = dma.done.wait [#allocation3], 32  }
  0x12   :  { %2061 = vsyncadd [#allocation3], 4294967264  ;;  %v23_v0 = vlaneseq  ;;  %v1812_v23 = vld [vmem:[#allocation2] ss:$0 sm:$0xff]  ;;  %v1813_v36 = vld [vmem:[#allocation2 + $0x1] ss:$0 sm:$0xff] }
  0x13   :  { %s2071_s0 = smov [#allocation5]  }
  0x14   :  { %v24_v1 = vshrl.u32 %v23_v0, 7  ;;  %s1800_s18 = sshll.u32 %s2071_s0, 4  ;;  %s1801_s18 = int_to_ptr.vmem [resolvable:$true] %s1800_s18 }
  0x15   :  { %s2038_s19 = scalar_lea.vmem %s1801_s18, 2048  ;;  %p2043_p9 = scmp.lt.s32.totalorder %s1801_s18, %s1801_s18 }
  0x16   :  { %v25_v2 = vadd.s32 8, %v24_v1  ;;  %v28_v3 = vadd.s32 32, %v24_v1  ;;  %v29_v4 = vadd.s32 40, %v24_v1  ;;  %v30_v5 = vadd.s32 48, %v24_v1  ;;  %p2039_p8 = scmp.ne.s32.totalorder %s1801_s18, %s2038_s19  ;;  %p2044_p10 = scmp.lt.s32.totalorder %s2038_s19, %s2038_s19 }
  0x17   :  { %v31_v6 = vadd.s32 56, %v24_v1  ;;  %v32_v7 = vadd.s32 64, %v24_v1  ;;  %v33_v8 = vadd.s32 72, %v24_v1  ;;  %v34_v9 = vadd.s32 80, %v24_v1 }
  0x18   :  { %v35_v10 = vadd.s32 88, %v24_v1  ;;  %v36_v11 = vadd.s32 96, %v24_v1  ;;  %v37_v12 = vadd.s32 104, %v24_v1  ;;  %v38_v13 = vadd.s32 112, %v24_v1  ;;  %p2045_p11 = por %p2044_p10, %p2043_p9 }
  0x19   :  { %v39_v14 = vadd.s32 120, %v24_v1  ;;  %v26_v15 = vadd.s32 16, %v24_v1  ;;  %v40_v16 = vcvt.s32.f32 %v24_v1  ;;  %v41_v17 = vcvt.s32.f32 %v25_v2 }
  0x1a   :  { %v44_v18 = vcvt.s32.f32 %v28_v3  ;;  %v45_v19 = vcvt.s32.f32 %v29_v4  ;;  %v46_v20 = vcvt.s32.f32 %v30_v5  ;;  %v47_v21 = vcvt.s32.f32 %v31_v6  ;;  %p2046_p12 = pnand %p2045_p11, %p2039_p8 }
  0x1b   :  { %v48_v22 = vcvt.s32.f32 %v32_v7  ;;  %v49_v24 = vcvt.s32.f32 %v33_v8  ;;  %v50_v25 = vcvt.s32.f32 %v34_v9  ;;  %v51_v26 = vcvt.s32.f32 %v35_v10 }
  0x1c   :  { %v52_v27 = vcvt.s32.f32 %v36_v11  ;;  %v27_v28 = vadd.s32 24, %v24_v1  ;;  %v53_v29 = vcvt.s32.f32 %v37_v12  ;;  %v54_v30 = vcvt.s32.f32 %v38_v13 }
  0x1d   :  { %v55_v31 = vcvt.s32.f32 %v39_v14  ;;  %v42_v32 = vcvt.s32.f32 %v26_v15  ;;  %v79_v33 = vmul.f32 %v1812_v23, %v40_v16  ;;  %v80_v34 = vmul.f32 %v1812_v23, %v41_v17 }
  0x1e   :  { %v83_v35 = vmul.f32 %v1812_v23, %v44_v18  ;;  %v84_v37 = vmul.f32 %v1812_v23, %v45_v19  ;;  %v85_v38 = vmul.f32 %v1812_v23, %v46_v20  ;;  %v86_v39 = vmul.f32 %v1812_v23, %v47_v21 }
  0x1f   :  { %v87_v40 = vmul.f32 %v1812_v23, %v48_v22  ;;  %v88_v41 = vmul.f32 %v1812_v23, %v49_v24  ;;  %v89_v42 = vmul.f32 %v1812_v23, %v50_v25  ;;  %v90_v43 = vmul.f32 %v1812_v23, %v51_v26 }
  0x20   :  { %v91_v44 = vmul.f32 %v1812_v23, %v52_v27  ;;  %v43_v45 = vcvt.s32.f32 %v27_v28  ;;  %v92_v46 = vmul.f32 %v1812_v23, %v53_v29  ;;  %v93_v47 = vmul.f32 %v1812_v23, %v54_v30 }
  0x21   :  { %v94_v48 = vmul.f32 %v1812_v23, %v55_v31  ;;  %v81_v49 = vmul.f32 %v1812_v23, %v42_v32  ;;  %v2096_v50 = vadd.f32 %v1813_v36, %v79_v33  ;;  %v2098_v51 = vadd.f32 %v1813_v36, %v80_v34 }
  0x22   :  { %v2100_v52 = vadd.f32 %v1813_v36, %v83_v35  ;;  %v2102_v53 = vadd.f32 %v1813_v36, %v84_v37  ;;  %v2104_v54 = vadd.f32 %v1813_v36, %v85_v38  ;;  %v2106_v55 = vadd.f32 %v1813_v36, %v86_v39 }
  0x23   :  { %v2108_v56 = vadd.f32 %v1813_v36, %v87_v40  ;;  %v2110_v57 = vadd.f32 %v1813_v36, %v88_v41  ;;  %v2112_v58 = vadd.f32 %v1813_v36, %v89_v42  ;;  %v2114_v59 = vadd.f32 %v1813_v36, %v90_v43 }
  0x24   :  { %v2116_v60 = vadd.f32 %v1813_v36, %v91_v44  ;;  %v2118_v61 = vadd.f32 %v1813_v36, %v92_v46  ;;  %v2120_v62 = vadd.f32 %v1813_v36, %v93_v47  ;;  %v2122_v63 = vadd.f32 %v1813_v36, %v94_v48 }
  0x25   :  { %v115_v0 = vand.u32 2147483647, %v2096_v50  ;;  %v2125_v1 = vadd.f32 %v1813_v36, %v81_v49  ;;  %v118_v2 = vand.u32 2139095040, %v2096_v50  ;;  %v219_v3 = vand.u32 2147483647, %v2098_v51 }
  0x26   :  { %v222_v5 = vand.u32 2139095040, %v2098_v51  ;;  %v82_v7 = vmul.f32 %v1812_v23, %v43_v45  ;;  %v2065_v32 = vmov 683565275   ;;  %v2066_v34 = vmov 2475754826  }
  0x27   :  { %v122_v4 = vand.u32 8388607, %v115_v0  ;;  %v119_v6 = vshrl.u32 %v118_v2, 23  ;;  %v226_v9 = vand.u32 8388607, %v219_v3  ;;  %v326_v11 = vand.u32 2139095040, %v2125_v1 }
  0x28   :  { %v223_v8 = vshrl.u32 %v222_v5, 23  ;;  %v323_v15 = vand.u32 2147483647, %v2125_v1  ;;  %v2136_v17 = vadd.f32 %v1813_v36, %v82_v7  ;;  %v2067_v36 = vmov 2131351028  }
  0x29   :  { %v1814_v10 = vadd.s32 4294967169, %v119_v6  ;;  %v123_v12 = vor.u32 8388608, %v122_v4  ;;  %v327_v16 = vshrl.u32 %v326_v11, 23  ;;  %v227_v18 = vor.u32 8388608, %v226_v9 }
  0x2a   :  { %v1818_v13 = vadd.s32 4294967169, %v223_v8  ;;  %v2142_v26 = vand.u32 8388607, %v323_v15  ;;  %v430_v30 = vand.u32 2139095040, %v2136_v17  ;;  %v2068_v38 = vmov 2102212464  }
  0x2b   :  { %v125_v14 = vadd.s32 1, %v1814_v10  ;;  %v1822_v20 = vadd.s32 4294967169, %v327_v16  ;;  %v2138_v22 = vshll.u32 %v123_v12, 8  ;;  %v2144_v28 = vshll.u32 %v227_v18, 8 }
  0x2c   :  { %v229_v19 = vadd.s32 1, %v1818_v13  ;;  %v2069_v40 = vmov 920167782   ;;  %v2070_v48 = vmov 1326507024   ;;  %vm117_vm13 = vcmp.lt.s32.totalorder %v2096_v50, 0 }
  0x2d   :  { %vm126_vm0 = vcmp.gt.s32.totalorder %v125_v14, 0  ;;  %v2146_v29 = vadd.s32 1, %v1822_v20  ;;  %vm2249_vm14 = vcmp.le.f32.partialorder %v115_v0, 0.7853982  ;;  %vm221_vm15 = vcmp.lt.s32.totalorder %v2098_v51, 0 }
  0x2e   :  { %v127_v21 = vsel %vm126_vm0, %v125_v14, 0  ;;  %vm230_vm1 = vcmp.gt.s32.totalorder %v229_v19, 0 }
  0x2f   :  { %v128_v23 = vshrl.u32 %v127_v21, 5  ;;  %v129_v24 = vand.u32 31, %v127_v21  ;;  %v231_v25 = vsel %vm230_vm1, %v229_v19, 0  ;;  %vm334_vm11 = vcmp.gt.s32.totalorder %v2146_v29, 0 }
  0x30   :  { %v233_v27 = vand.u32 31, %v231_v25  ;;  %v2154_v42 = vshrl.u32 %v231_v25, 5 }
  0x31   :  { %v130_v31 = vsub.s32 32, %v129_v24  ;;  %v132_v33 = vshll.u32 %v2065_v32, %v129_v24  ;;  %v135_v35 = vshll.u32 %v2066_v34, %v129_v24  ;;  %v138_v37 = vshll.u32 %v2067_v36, %v129_v24 }
  0x32   :  { %v141_v39 = vshll.u32 %v2068_v38, %v129_v24  ;;  %v144_v41 = vshll.u32 %v2069_v40, %v129_v24  ;;  %vm147_vm2 = vcmp.lt.s32.totalorder %v128_v23, 1  ;;  %vm148_vm3 = vcmp.lt.s32.totalorder %v128_v23, 2 }
  0x33   :  { %v131_v43 = vshrl.u32 %v2065_v32, %v130_v31  ;;  %v133_v44 = vshrl.u32 %v2066_v34, %v130_v31  ;;  %v136_v45 = vshrl.u32 %v2067_v36, %v130_v31  ;;  %v139_v46 = vshrl.u32 %v2068_v38, %v130_v31 }
  0x34   :  { %v142_v47 = vshrl.u32 %v2069_v40, %v130_v31  ;;  %v145_v49 = vshrl.u32 %v2070_v48, %v130_v31  ;;  %vm150_vm4 = vcmp.lt.s32.totalorder %v128_v23, 4  ;;  %v234_v6 = vsub.s32 32, %v233_v27 }
  0x35   :  { %v134_v2 = vor.u32 %v133_v44, %v132_v33  ;;  %v137_v4 = vor.u32 %v136_v45, %v135_v35  ;;  %v140_v5 = vor.u32 %v139_v46, %v138_v37  ;;  %vm149_vm5 = vcmp.lt.s32.totalorder %v128_v23, 3 }
  0x36   :  { %v143_v7 = vor.u32 %v142_v47, %v141_v39  ;;  %v146_v8 = vor.u32 %v145_v49, %v144_v41  ;;  %v236_v9 = vshll.u32 %v2065_v32, %v233_v27  ;;  %v239_v19 = vshll.u32 %v2066_v34, %v233_v27 }
  0x37   :  { %v151_v10 = vsel %vm147_vm2, %v131_v43, %v134_v2  ;;  %v152_v11 = vsel %vm150_vm4, %v140_v5, 2102212464  ;;  %v155_v12 = vsel %vm147_vm2, %v134_v2, %v137_v4  ;;  %v159_v13 = vsel %vm147_vm2, %v137_v4, %v140_v5 }
  0x38   :  { %v153_v14 = vsel %vm149_vm5, %v137_v4, %v152_v11  ;;  %v156_v16 = vsel %vm150_vm4, %v143_v7, 920167782  ;;  %v160_v18 = vsel %vm150_vm4, %v146_v8, 1326507024  ;;  %v235_v24 = vshrl.u32 %v2065_v32, %v234_v6 }
  0x39   :  { %v157_v20 = vsel %vm149_vm5, %v140_v5, %v156_v16  ;;  %v161_v21 = vsel %vm149_vm5, %v143_v7, %v160_v18  ;;  %v237_v25 = vshrl.u32 %v2066_v34, %v234_v6  ;;  %v154_v31 = vsel %vm148_vm3, %v151_v10, %v153_v14 }
  0x3a   :  { %v158_v33 = vsel %vm148_vm3, %v155_v12, %v157_v20  ;;  %v162_v35 = vsel %vm148_vm3, %v159_v13, %v161_v21  ;;  %v240_v37 = vshrl.u32 %v2067_v36, %v234_v6  ;;  %v242_v47 = vshll.u32 %v2067_v36, %v233_v27 }
  0x3b   :  { %v2174_v39 = vmul.u32.u64.low %v2138_v22, %v162_v35  ;;  %v2175_v41 = vmul.u32.u64.high %v2138_v22, %v162_v35, %v2174_v39  ;;  %v2178_v43 = vmul.u32.u64.low %v2138_v22, %v158_v33  ;;  %v2179_v44 = vmul.u32.u64.high %v2138_v22, %v158_v33, %v2178_v43 }
  0x3c   :  { %v238_v45 = vor.u32 %v237_v25, %v236_v9  ;;  %v241_v46 = vor.u32 %v240_v37, %v239_v19  ;;  %v243_v49 = vshrl.u32 %v2068_v38, %v234_v6  ;;  %v245_v23 = vshll.u32 %v2068_v38, %v233_v27 }
  0x3d   :  { %v246_v2 = vshrl.u32 %v2069_v40, %v234_v6  ;;  %v248_v4 = vshll.u32 %v2069_v40, %v233_v27  ;;  %v249_v5 = vshrl.u32 %v2070_v48, %v234_v6  ;;  %v170_v7 = vmul.u32 %v2138_v22, %v154_v31 }
  0x3e   :  { %v244_v8 = vor.u32 %v243_v49, %v242_v47  ;;  %vm251_vm6 = vcmp.lt.s32.totalorder %v2154_v42, 1  ;;  %vm252_vm7 = vcmp.lt.s32.totalorder %v2154_v42, 2  ;;  %vm172_vm8 = vc.u32 %v2175_v41, %v2178_v43 }
  0x3f   :  { %v173_v9 = vadd.s32 1, %v2179_v44  ;;  %v247_v10 = vor.u32 %v246_v2, %v245_v23  ;;  %vm253_vm9 = vcmp.lt.s32.totalorder %v2154_v42, 3  ;;  %v250_v11 = vor.u32 %v249_v5, %v248_v4 }
  0x40   :  { %vm254_vm10 = vcmp.lt.s32.totalorder %v2154_v42, 4  ;;  %v255_v27 = vsel %vm251_vm6, %v235_v24, %v238_v45  ;;  %v259_v6 = vsel %vm251_vm6, %v238_v45, %v241_v46  ;;  %v263_v14 = vsel %vm251_vm6, %v241_v46, %v244_v8 }
  0x41   :  { %v174_v22 = vsel %vm172_vm8, %v173_v9, %v2179_v44  ;;  %v256_v12 = vsel %vm254_vm10, %v244_v8, 2102212464  ;;  %v260_v13 = vsel %vm254_vm10, %v247_v10, 920167782  ;;  %v264_v20 = vsel %vm254_vm10, %v250_v11, 1326507024 }
  0x42   :  { %v175_v16 = vadd.s32 %v174_v22, %v170_v7  ;;  %v257_v18 = vsel %vm253_vm9, %v241_v46, %v256_v12  ;;  %v261_v19 = vsel %vm253_vm9, %v244_v8, %v260_v13  ;;  %v265_v31 = vsel %vm253_vm9, %v247_v10, %v264_v20 }
  0x43   :  { %v258_v21 = vsel %vm252_vm7, %v255_v27, %v257_v18  ;;  %v262_v25 = vsel %vm252_vm7, %v259_v6, %v261_v19  ;;  %v266_v33 = vsel %vm252_vm7, %v263_v14, %v265_v31  ;;  %v335_v45 = vsel %vm334_vm11, %v2146_v29, 0 }
  0x44   :  { %v176_v24 = vadd.s32 536870912, %v175_v16  ;;  %v2205_v35 = vmul.u32.u64.low %v2144_v28, %v262_v25  ;;  %v2206_v37 = vmul.u32.u64.high %v2144_v28, %v262_v25, %v2205_v35  ;;  %v337_v47 = vand.u32 31, %v335_v45 }
  0x45   :  { %v2210_v39 = vmul.u32.u64.low %v2144_v28, %v266_v33  ;;  %v2211_v44 = vmul.u32.u64.high %v2144_v28, %v266_v33, %v2210_v39  ;;  %v427_v49 = vand.u32 2147483647, %v2136_v17  ;;  %v274_v23 = vmul.u32 %v2144_v28, %v258_v21 }
  0x46   :  { %v177_v46 = vshrl.u32 %v176_v24, 30  ;;  %v331_v42 = vor.u32 8388608, %v2142_v26  ;;  %v431_v2 = vshrl.u32 %v430_v30, 23  ;;  %v277_v5 = vadd.s32 1, %v2206_v37 }
  0x47   :  { %vm276_vm12 = vc.u32 %v2211_v44, %v2205_v35  ;;  %v338_v7 = vsub.s32 32, %v337_v47  ;;  %v2228_v28 = vand.u32 8388607, %v427_v49  ;;  %v2230_v9 = vshrl.u32 %v335_v45, 5 }
  0x48   :  { %v178_v4 = vshll.u32 %v177_v46, 30  ;;  %v278_v8 = vsel %vm276_vm12, %v277_v5, %v2206_v37  ;;  %v2232_v30 = vshll.u32 %v331_v42, 8  ;;  %v1826_v10 = vadd.s32 4294967169, %v431_v2 }
  0x49   :  { %v279_v26 = vadd.s32 %v278_v8, %v274_v23  ;;  %v201_v27 = vsub.s32 4, %v177_v46  ;;  %v340_v6 = vshll.u32 %v2065_v32, %v337_v47  ;;  %v343_v22 = vshll.u32 %v2066_v34, %v337_v47 }
  0x4a   :  { %v2223_v29 = vsub.s32 %v175_v16, %v178_v4  ;;  %v341_v13 = vshrl.u32 %v2066_v34, %v338_v7  ;;  %v344_v14 = vshrl.u32 %v2067_v36, %v338_v7  ;;  %v346_v16 = vshll.u32 %v2067_v36, %v337_v47 }
  0x4b   :  { %v280_v12 = vadd.s32 536870912, %v279_v26  ;;  %v347_v19 = vshrl.u32 %v2068_v38, %v338_v7  ;;  %v349_v20 = vshll.u32 %v2068_v38, %v337_v47  ;;  %v350_v21 = vshrl.u32 %v2069_v40, %v338_v7 }
  0x4c   :  { %v181_v11 = vsub.s32 0, %v2223_v29  ;;  %v352_v31 = vshll.u32 %v2069_v40, %v337_v47  ;;  %v353_v24 = vshrl.u32 %v2070_v48, %v338_v7  ;;  %v435_v33 = vor.u32 8388608, %v2228_v28 }
  0x4d   :  { %v281_v25 = vshrl.u32 %v280_v12, 30  ;;  %v171_v39 = vadd.s32 %v2178_v43, %v2175_v41  ;;  %v202_v23 = vsel %vm117_vm13, %v201_v27, %v177_v46  ;;  %v437_v47 = vadd.s32 1, %v1826_v10 }
  0x4e   :  { %v1815_v18 = vmin.u32 %v181_v11, %v2223_v29  ;;  %v339_v2 = vshrl.u32 %v2065_v32, %v338_v7  ;;  %v342_v4 = vor.u32 %v341_v13, %v340_v6  ;;  %v345_v5 = vor.u32 %v344_v14, %v343_v22 }
  0x4f   :  { %v282_v42 = vshll.u32 %v281_v25, 30  ;;  %v348_v0 = vor.u32 %v347_v19, %v346_v16  ;;  %v351_v11 = vor.u32 %v350_v21, %v349_v20  ;;  %vm355_vm0 = vcmp.lt.s32.totalorder %v2230_v9, 1 }
  0x50   :  { %v183_v45 = vclz %v1815_v18  ;;  %v305_v41 = vsub.s32 4, %v281_v25  ;;  %v354_v43 = vor.u32 %v353_v24, %v352_v31  ;;  %vm358_vm1 = vcmp.lt.s32.totalorder %v2230_v9, 4 }
  0x51   :  { %v2260_v12 = vsub.s32 %v279_v26, %v282_v42  ;;  %vm2265_vm3 = vcmp.le.f32.partialorder %v219_v3, 0.7853982  ;;  %vm356_vm4 = vcmp.lt.s32.totalorder %v2230_v9, 2  ;;  %vm357_vm5 = vcmp.lt.s32.totalorder %v2230_v9, 3 }
  0x52   :  { %v1816_v8 = vadd.s32 4294967294, %v183_v45  ;;  %v360_v7 = vsel %vm358_vm1, %v348_v0, 2102212464  ;;  %v359_v27 = vsel %vm355_vm0, %v339_v2, %v342_v4  ;;  %v363_v6 = vsel %vm355_vm0, %v342_v4, %v345_v5 }
  0x53   :  { %v285_v10 = vsub.s32 0, %v2260_v12  ;;  %v364_v14 = vsel %vm358_vm1, %v351_v11, 920167782  ;;  %v361_v18 = vsel %vm357_vm5, %v345_v5, %v360_v7  ;;  %v367_v20 = vsel %vm355_vm0, %v345_v5, %v348_v0 }
  0x54   :  { %vm1817_vm2 = vcmp.lt.s32.totalorder %v1816_v8, 0  ;;  %v365_v19 = vsel %vm357_vm5, %v348_v0, %v364_v14  ;;  %v368_v24 = vsel %vm358_vm1, %v354_v43, 1326507024  ;;  %v204_v45 = vsel %vm2249_vm14, 0, %v202_v23 }
  0x55   :  { %v186_v26 = vsel %vm1817_vm2, 0, %v1816_v8  ;;  %v1819_v16 = vmin.u32 %v285_v10, %v2260_v12  ;;  %v275_v42 = vadd.s32 %v2205_v35, %v2211_v44  ;;  %v306_v4 = vsel %vm221_vm15, %v305_v41, %v281_v25 }
  0x56   :  { %v187_v3 = vsub.s32 32, %v186_v26  ;;  %v188_v22 = vshll.u32 %v2223_v29, %v186_v26  ;;  %v191_v13 = vsub.s32 4294967266, %v186_v26  ;;  %v366_v29 = vsel %vm356_vm4, %v363_v6, %v365_v19 }
  0x57   :  { %v287_v2 = vclz %v1819_v16  ;;  %v369_v0 = vsel %vm357_vm5, %v351_v11, %v368_v24  ;;  %v2305_v23 = vmul.u32.u64.low %v2232_v30, %v366_v29  ;;  %v2306_v26 = vmul.u32.u64.high %v2232_v30, %v366_v29, %v2305_v23 }
  0x58   :  { %v189_v21 = vshrl.u32 %v171_v39, %v187_v3  ;;  %v192_v31 = vadd.s32 127, %v191_v13  ;;  %v362_v39 = vsel %vm356_vm4, %v359_v27, %v361_v18  ;;  %v370_v43 = vsel %vm356_vm4, %v367_v20, %v369_v0 }
  0x59   :  { %v1820_v7 = vadd.s32 4294967294, %v287_v2  ;;  %v2310_v25 = vmul.u32.u64.low %v2232_v30, %v370_v43  ;;  %v2311_v41 = vmul.u32.u64.high %v2232_v30, %v370_v43, %v2310_v25  ;;  %v208_v10 = vadd.s32 3, %v204_v45 }
  0x5a   :  { %v190_v8 = vor.u32 %v189_v21, %v188_v22  ;;  %v193_v5 = vshll.u32 %v192_v31, 23  ;;  %v308_v11 = vsel %vm2265_vm3, 0, %v306_v4  ;;  %vm438_vm7 = vcmp.gt.s32.totalorder %v437_v47, 0 }
  0x5b   :  { %vm1821_vm6 = vcmp.lt.s32.totalorder %v1820_v7, 0  ;;  %v378_v6 = vmul.u32 %v2232_v30, %v362_v39  ;;  %v439_v3 = vsel %vm438_vm7, %v437_v47, 0  ;;  %v381_v16 = vadd.s32 1, %v2306_v26 }
  0x5c   :  { %v194_v35 = vor.u32 4788187, %v193_v5  ;;  %v197_v44 = vcvt.s32.f32 %v190_v8  ;;  %v290_v9 = vsel %vm1821_vm6, 0, %v1820_v7  ;;  %vm380_vm8 = vc.u32 %v2311_v41, %v2305_v23 }
  0x5d   :  { %v291_v22 = vsub.s32 32, %v290_v9  ;;  %v292_v13 = vshll.u32 %v2260_v12, %v290_v9  ;;  %v295_v14 = vsub.s32 4294967266, %v290_v9  ;;  %v2322_v19 = vshll.u32 %v435_v33, 8 }
  0x5e   :  { %v195_v27 = vand.u32 2147483647, %v194_v35  ;;  %v531_v20 = vand.u32 2147483647, %v2100_v52  ;;  %v382_v30 = vsel %vm380_vm8, %v381_v16, %v2306_v26  ;;  %v441_v47 = vand.u32 31, %v439_v3 }
  0x5f   :  { %v293_v21 = vshrl.u32 %v275_v42, %v291_v22  ;;  %v296_v31 = vadd.s32 127, %v295_v14  ;;  %v2326_v12 = vand.u32 3, %v208_v10  ;;  %v312_v24 = vadd.s32 3, %v308_v11 }
  0x60   :  { %v198_v18 = vmul.f32 %v197_v44, %v195_v27  ;;  %v383_v45 = vadd.s32 %v382_v30, %v378_v6  ;;  %v2328_v8 = vshrl.u32 %v439_v3, 5  ;;  %v442_v5 = vsub.s32 32, %v441_v47 }
  0x61   :  { %v294_v2 = vor.u32 %v293_v21, %v292_v13  ;;  %v297_v4 = vshll.u32 %v296_v31, 23  ;;  %v444_v42 = vshll.u32 %v2065_v32, %v441_v47  ;;  %v447_v39 = vshll.u32 %v2066_v34, %v441_v47 }
  0x62   :  { %v199_v29 = vxor.u32 2147483648, %v198_v18  ;;  %v384_v33 = vadd.s32 536870912, %v383_v45  ;;  %v450_v26 = vshll.u32 %v2067_v36, %v441_v47  ;;  %v445_v44 = vshrl.u32 %v2066_v34, %v442_v5 }
  0x63   :  { %v298_v7 = vor.u32 4788187, %v297_v4  ;;  %v301_v43 = vcvt.s32.f32 %v294_v2  ;;  %v448_v25 = vshrl.u32 %v2067_v36, %v442_v5  ;;  %v451_v11 = vshrl.u32 %v2068_v38, %v442_v5 }
  0x64   :  { %v200_v28 = vsel %vm117_vm13, %v199_v29, %v198_v18  ;;  %v385_v35 = vshrl.u32 %v384_v33, 30  ;;  %v453_v27 = vshll.u32 %v2068_v38, %v441_v47  ;;  %vm214_vm9 = vcmp.eq.s32.totalorder %v2326_v12, 2 }
  0x65   :  { %v203_v0 = vsel %vm2249_vm14, %v2096_v50, %v200_v28  ;;  %v299_v10 = vand.u32 2147483647, %v298_v7  ;;  %v2343_v37 = vand.u32 3, %v312_v24  ;;  %vm325_vm10 = vcmp.lt.s32.totalorder %v2125_v1, 0 }
  0x66   :  { %1952 = vcosq.f32 %v203_v0  ;;  %v386_v9 = vshll.u32 %v385_v35, 30  ;;  %vm459_vm11 = vcmp.lt.s32.totalorder %v2328_v8, 1  ;;  %vm211_vm12 = vcmp.eq.s32.totalorder %v2326_v12, 0 }
  0x67   :  { %1954 = vsinq.f32 %v203_v0  ;;  %v302_v6 = vmul.f32 %v301_v43, %v299_v10  ;;  %v443_v3 = vshrl.u32 %v2065_v32, %v442_v5  ;;  %v454_v22 = vshrl.u32 %v2069_v40, %v442_v5 }
  0x68   :  { %v456_v13 = vshll.u32 %v2069_v40, %v441_v47  ;;  %vm210_vm13 = vcmp.lt.s32.totalorder %v2326_v12, 2  ;;  %v2352_v14 = vsub.s32 %v383_v45, %v386_v9  ;;  %v446_v16 = vor.u32 %v445_v44, %v444_v42 }
  0x69   :  { %v449_v18 = vor.u32 %v448_v25, %v447_v39  ;;  %v457_v21 = vshrl.u32 %v2070_v48, %v442_v5  ;;  %vm207_vm14 = vweird.f32 %v2096_v50  ;;  %v303_v31 = vxor.u32 2147483648, %v302_v6 }
  0x6a   :  { %v452_v30 = vor.u32 %v451_v11, %v450_v26  ;;  %v455_v29 = vor.u32 %v454_v22, %v453_v27  ;;  %vm462_vm0 = vcmp.lt.s32.totalorder %v2328_v8, 4  ;;  %v389_v24 = vsub.s32 0, %v2352_v14 }
  0x6b   :  { %v409_v2 = vsub.s32 4, %v385_v35  ;;  %vm461_vm1 = vcmp.lt.s32.totalorder %v2328_v8, 3  ;;  %v534_v47 = vand.u32 2139095040, %v2100_v52  ;;  %v304_v45 = vsel %vm221_vm15, %v303_v31, %v302_v6 }
  0x6c   :  { %v458_v4 = vor.u32 %v457_v21, %v456_v13  ;;  %v464_v5 = vsel %vm462_vm0, %v452_v30, 2102212464  ;;  %v468_v28 = vsel %vm462_vm0, %v455_v29, 920167782  ;;  %v307_v33 = vsel %vm2265_vm3, %v2098_v51, %v304_v45 }
  0x6d   :  { %v1823_v42 = vmin.u32 %v389_v24, %v2352_v14  ;;  %vm460_vm2 = vcmp.lt.s32.totalorder %v2328_v8, 2  ;;  %v467_v39 = vsel %vm459_vm11, %v446_v16, %v449_v18  ;;  %1956 = vcosq.f32 %v307_v33 }
  0x6e   :  { %v463_v0 = vsel %vm459_vm11, %v443_v3, %v446_v16  ;;  %v465_v7 = vsel %vm461_vm1, %v449_v18, %v464_v5  ;;  %v469_v43 = vsel %vm461_vm1, %v452_v30, %v468_v28  ;;  %1958 = vsinq.f32 %v307_v33 }
  0x6f   :  { %v379_v46 = vadd.s32 %v2305_v23, %v2311_v41  ;;  %v391_v44 = vclz %v1823_v42  ;;  %v471_v25 = vsel %vm459_vm11, %v449_v18, %v452_v30  ;;  %v410_v27 = vsel %vm325_vm10, %v409_v2, %v385_v35 }
  0x70   :  { %v1953_v26 = vpop.eup %1952  ;;  %v470_v9 = vsel %vm460_vm2, %v467_v39, %v469_v43  ;;  %v472_v6 = vsel %vm462_vm0, %v458_v4, 1326507024  ;;  %v466_v23 = vsel %vm460_vm2, %v463_v0, %v465_v7  ;;  %v535_v2 = vshrl.u32 %v534_v47, 23 }
  0x71   :  { %v1955_v10 = vpop.eup %1954  ;;  %v215_v11 = vxor.u32 2147483648, %v1953_v26  ;;  %v1824_v22 = vadd.s32 4294967294, %v391_v44  ;;  %v473_v41 = vsel %vm461_vm1, %v455_v29, %v472_v6  ;;  %v482_v8 = vmul.u32 %v2322_v19, %v466_v23 }
  0x72   :  { %v212_v3 = vxor.u32 2147483648, %v1955_v10  ;;  %v474_v35 = vsel %vm460_vm2, %v471_v25, %v473_v41  ;;  %v2398_v16 = vmul.u32.u64.low %v2322_v19, %v470_v9  ;;  %v2399_v18 = vmul.u32.u64.high %v2322_v19, %v470_v9, %v2398_v16 }
  0x73   :  { %v216_v13 = vsel %vm214_vm9, %v215_v11, %v1955_v10  ;;  %vm1825_vm15 = vcmp.lt.s32.totalorder %v1824_v22, 0  ;;  %v2405_v31 = vmul.u32.u64.low %v2322_v19, %v474_v35  ;;  %v2406_v30 = vmul.u32.u64.high %v2322_v19, %v474_v35, %v2405_v31 }
  0x74   :  { %v213_v21 = vsel %vm211_vm12, %v1953_v26, %v212_v3  ;;  %v394_v24 = vsel %vm1825_vm15, 0, %v1824_v22  ;;  %vm315_vm3 = vcmp.eq.s32.totalorder %v2343_v37, 0  ;;  %vm2417_vm4 = vcmp.le.f32.partialorder %v323_v15, 0.7853982 }
  0x75   :  { %v217_v29 = vsel %vm210_vm13, %v213_v21, %v216_v13  ;;  %v395_v4 = vsub.s32 32, %v394_v24  ;;  %v396_v5 = vshll.u32 %v2352_v14, %v394_v24  ;;  %v399_v28 = vsub.s32 4294967266, %v394_v24 }
  0x76   :  { %v218_v45 = vsel %vm207_vm14, nan, %v217_v29  ;;  %v485_v12 = vadd.s32 1, %v2399_v18  ;;  %v1830_v42 = vadd.s32 4294967169, %v535_v2  ;;  %vm318_vm5 = vcmp.eq.s32.totalorder %v2343_v37, 2 }
  0x77   :  { %1779 = vst [vmem:[#allocation5] sm:$0xff] %v218_v45  ;;  %v397_v50 = vshrl.u32 %v379_v46, %v395_v4  ;;  %v400_v19 = vadd.s32 127, %v399_v28  ;;  %vm484_vm6 = vc.u32 %v2406_v30, %v2398_v16  ;;  %v1957_v14 = vpop.eup %1956  ;;  %v412_v47 = vsel %vm2417_vm4, 0, %v410_v27 }
  0x78   :  { %v486_v15 = vsel %vm484_vm6, %v485_v12, %v2399_v18  ;;  %v538_v39 = vand.u32 8388607, %v531_v20  ;;  %v541_v0 = vadd.s32 1, %v1830_v42  ;;  %v1959_v7 = vpop.eup %1958  ;;  %v319_v43 = vxor.u32 2147483648, %v1957_v14 }
  0x79   :  { %v398_v26 = vor.u32 %v397_v50, %v396_v5  ;;  %v401_v44 = vshll.u32 %v400_v19, 23  ;;  %v487_v25 = vadd.s32 %v486_v15, %v482_v8  ;;  %vm311_vm7 = vweird.f32 %v2098_v51 }
  0x7a   :  { %vm314_vm8 = vcmp.lt.s32.totalorder %v2343_v37, 2  ;;  %v316_v46 = vxor.u32 2147483648, %v1959_v7  ;;  %vm542_vm9 = vcmp.gt.s32.totalorder %v541_v0, 0  ;;  %v320_v10 = vsel %vm318_vm5, %v319_v43, %v1959_v7 }
  0x7b   :  { %v402_v11 = vor.u32 4788187, %v401_v44  ;;  %v405_v27 = vcvt.s32.f32 %v398_v26  ;;  %v488_v9 = vadd.s32 536870912, %v487_v25  ;;  %v416_v3 = vadd.s32 3, %v412_v47 }
  0x7c   :  { %v317_v6 = vsel %vm315_vm3, %v1957_v14, %v316_v46  ;;  %v539_v22 = vor.u32 8388608, %v538_v39  ;;  %v543_v23 = vsel %vm542_vm9, %v541_v0, 0  ;;  %v638_v21 = vand.u32 2139095040, %v2102_v53 }
  0x7d   :  { %v321_v41 = vsel %vm314_vm8, %v317_v6, %v320_v10  ;;  %v403_v13 = vand.u32 2147483647, %v402_v11  ;;  %v2436_v35 = vshrl.u32 %v488_v9, 30  ;;  %v545_v18 = vand.u32 31, %v543_v23 }
  0x7e   :  { %v322_v51 = vsel %vm311_vm7, nan, %v321_v41  ;;  %v544_v24 = vshrl.u32 %v543_v23, 5  ;;  %v2440_v8 = vand.u32 3, %v416_v3  ;;  %v2443_v45 = vshll.u32 %v539_v22, 8 }
  0x7f   :  { %v406_v31 = vmul.f32 %v405_v27, %v403_v13  ;;  %v490_v29 = vshll.u32 %v2436_v35, 30  ;;  %1780 = vst [vmem:[#allocation5 + $0x8] sm:$0xff] %v322_v51  ;;  %v546_v37 = vsub.s32 32, %v545_v18  ;;  %v548_v2 = vshll.u32 %v2065_v32, %v545_v18 }
  0x80   :  { %v551_v28 = vshll.u32 %v2066_v34, %v545_v18  ;;  %v554_v12 = vshll.u32 %v2067_v36, %v545_v18  ;;  %v557_v19 = vshll.u32 %v2068_v38, %v545_v18  ;;  %v639_v14 = vshrl.u32 %v638_v21, 23 }
  0x81   :  { %v407_v4 = vxor.u32 2147483648, %v406_v31  ;;  %v2445_v5 = vsub.s32 %v487_v25, %v490_v29  ;;  %v549_v42 = vshrl.u32 %v2066_v34, %v546_v37  ;;  %v552_v50 = vshrl.u32 %v2067_v36, %v546_v37 }
  0x82   :  { %v555_v39 = vshrl.u32 %v2068_v38, %v546_v37  ;;  %vm563_vm11 = vcmp.lt.s32.totalorder %v544_v24, 1  ;;  %v547_v7 = vshrl.u32 %v2065_v32, %v546_v37  ;;  %v558_v26 = vshrl.u32 %v2069_v40, %v546_v37 }
  0x83   :  { %v408_v47 = vsel %vm325_vm10, %v407_v4, %v406_v31  ;;  %v493_v15 = vsub.s32 0, %v2445_v5  ;;  %v550_v43 = vor.u32 %v549_v42, %v548_v2  ;;  %v553_v25 = vor.u32 %v552_v50, %v551_v28 }
  0x84   :  { %v411_v0 = vsel %vm2417_vm4, %v2125_v1, %v408_v47  ;;  %v556_v46 = vor.u32 %v555_v39, %v554_v12  ;;  %v559_v10 = vor.u32 %v558_v26, %v557_v19  ;;  %v560_v11 = vshll.u32 %v2069_v40, %v545_v18 }
  0x85   :  { %1960 = vcosq.f32 %v411_v0  ;;  %v1827_v44 = vmin.u32 %v493_v15, %v2445_v5  ;;  %v561_v27 = vshrl.u32 %v2070_v48, %v546_v37  ;;  %vm429_vm10 = vcmp.lt.s32.totalorder %v2136_v17, 0 }
  0x86   :  { %1962 = vsinq.f32 %v411_v0  ;;  %v483_v33 = vadd.s32 %v2398_v16, %v2406_v30  ;;  %v635_v6 = vand.u32 2147483647, %v2102_v53  ;;  %v1834_v3 = vadd.s32 4294967169, %v639_v14 }
  0x87   :  { %v495_v9 = vclz %v1827_v44  ;;  %vm419_vm12 = vcmp.eq.s32.totalorder %v2440_v8, 0  ;;  %v562_v22 = vor.u32 %v561_v27, %v560_v11  ;;  %vm564_vm13 = vcmp.lt.s32.totalorder %v544_v24, 2 }
  0x88   :  { %vm565_vm14 = vcmp.lt.s32.totalorder %v544_v24, 3  ;;  %vm566_vm0 = vcmp.lt.s32.totalorder %v544_v24, 4  ;;  %vm418_vm1 = vcmp.lt.s32.totalorder %v2440_v8, 2  ;;  %v567_v41 = vsel %vm563_vm11, %v547_v7, %v550_v43 }
  0x89   :  { %v1828_v23 = vadd.s32 4294967294, %v495_v9  ;;  %v568_v13 = vsel %vm566_vm0, %v556_v46, 2102212464  ;;  %v571_v51 = vsel %vm563_vm11, %v550_v43, %v553_v25  ;;  %vm415_vm2 = vweird.f32 %v2125_v1 }
  0x8a   :  { %v569_v16 = vsel %vm565_vm14, %v553_v25, %v568_v13  ;;  %v572_v30 = vsel %vm566_vm0, %v559_v10, 920167782  ;;  %v575_v18 = vsel %vm563_vm11, %v553_v25, %v556_v46  ;;  %v576_v21 = vsel %vm566_vm0, %v562_v22, 1326507024 }
  0x8b   :  { %vm1829_vm15 = vcmp.lt.s32.totalorder %v1828_v23, 0  ;;  %v513_v31 = vsub.s32 4, %v2436_v35  ;;  %v573_v29 = vsel %vm565_vm14, %v556_v46, %v572_v30  ;;  %v577_v37 = vsel %vm565_vm14, %v559_v10, %v576_v21 }
  0x8c   :  { %v498_v2 = vsel %vm1829_vm15, 0, %v1828_v23  ;;  %v570_v4 = vsel %vm564_vm13, %v567_v41, %v569_v16  ;;  %v574_v28 = vsel %vm564_vm13, %v571_v51, %v573_v29  ;;  %v578_v12 = vsel %vm564_vm13, %v575_v18, %v577_v37 }
  0x8d   :  { %v499_v42 = vsub.s32 32, %v498_v2  ;;  %v500_v50 = vshll.u32 %v2445_v5, %v498_v2  ;;  %v503_v19 = vsub.s32 4294967266, %v498_v2  ;;  %v645_v14 = vadd.s32 1, %v1834_v3 }
  0x8e   :  { %v2480_v47 = vmul.u32.u64.low %v2443_v45, %v578_v12  ;;  %v2481_v15 = vmul.u32.u64.high %v2443_v45, %v578_v12, %v2480_v47  ;;  %v2484_v39 = vmul.u32.u64.low %v2443_v45, %v574_v28  ;;  %v2485_v0 = vmul.u32.u64.high %v2443_v45, %v574_v28, %v2484_v39 }
  0x8f   :  { %v1961_v7 = vpop.eup %1960  ;;  %vm422_vm3 = vcmp.eq.s32.totalorder %v2440_v8, 2  ;;  %v501_v43 = vshrl.u32 %v483_v33, %v499_v42  ;;  %v504_v24 = vadd.s32 127, %v503_v19  ;;  %vm646_vm4 = vcmp.gt.s32.totalorder %v645_v14, 0 }
  0x90   :  { %v1963_v26 = vpop.eup %1962  ;;  %v423_v44 = vxor.u32 2147483648, %v1961_v7  ;;  %v514_v5 = vsel %vm429_vm10, %v513_v31, %v2436_v35  ;;  %v642_v25 = vand.u32 8388607, %v635_v6  ;;  %v647_v46 = vsel %vm646_vm4, %v645_v14, 0 }
  0x91   :  { %v420_v10 = vxor.u32 2147483648, %v1963_v26  ;;  %v502_v11 = vor.u32 %v501_v43, %v500_v50  ;;  %v505_v27 = vshll.u32 %v504_v24, 23  ;;  %v586_v9 = vmul.u32 %v2443_v45, %v570_v4 }
  0x92   :  { %v424_v3 = vsel %vm422_vm3, %v423_v44, %v1963_v26  ;;  %vm2497_vm5 = vcmp.le.f32.partialorder %v427_v49, 0.7853982  ;;  %vm588_vm6 = vc.u32 %v2481_v15, %v2484_v39  ;;  %v589_v35 = vadd.s32 1, %v2485_v0 }
  0x93   :  { %v421_v22 = vsel %vm419_vm12, %v1961_v7, %v420_v10  ;;  %v506_v23 = vor.u32 4788187, %v505_v27  ;;  %v509_v41 = vcvt.s32.f32 %v502_v11  ;;  %v649_v13 = vand.u32 31, %v647_v46 }
  0x94   :  { %v425_v45 = vsel %vm418_vm1, %v421_v22, %v424_v3  ;;  %v516_v49 = vsel %vm2497_vm5, 0, %v514_v5  ;;  %v590_v51 = vsel %vm588_vm6, %v589_v35, %v2485_v0  ;;  %v643_v16 = vor.u32 8388608, %v642_v25 }
  0x95   :  { %v426_v30 = vsel %vm415_vm2, nan, %v425_v45  ;;  %v507_v18 = vand.u32 2147483647, %v506_v23  ;;  %v591_v21 = vadd.s32 %v590_v51, %v586_v9  ;;  %v650_v31 = vsub.s32 32, %v649_v13 }
  0x96   :  { %v648_v29 = vshrl.u32 %v647_v46, 5  ;;  %v652_v37 = vshll.u32 %v2065_v32, %v649_v13  ;;  %v655_v2 = vshll.u32 %v2066_v34, %v649_v13  ;;  %v661_v8 = vshll.u32 %v2068_v38, %v649_v13  ;;  %1781 = vst [vmem:[#allocation5 + $0x10] sm:$0xff] %v426_v30 }
  0x97   :  { %v510_v4 = vmul.f32 %v509_v41, %v507_v18  ;;  %v592_v28 = vadd.s32 536870912, %v591_v21  ;;  %v653_v12 = vshrl.u32 %v2066_v34, %v650_v31  ;;  %v658_v42 = vshll.u32 %v2067_v36, %v649_v13 }
  0x98   :  { %v656_v1 = vshrl.u32 %v2067_v36, %v650_v31  ;;  %v659_v50 = vshrl.u32 %v2068_v38, %v650_v31  ;;  %v662_v19 = vshrl.u32 %v2069_v40, %v650_v31  ;;  %v664_v14 = vshll.u32 %v2069_v40, %v649_v13 }
  0x99   :  { %v511_v47 = vxor.u32 2147483648, %v510_v4  ;;  %v593_v0 = vshrl.u32 %v592_v28, 30  ;;  %v654_v7 = vor.u32 %v653_v12, %v652_v37  ;;  %v665_v43 = vshrl.u32 %v2070_v48, %v650_v31 }
  0x9a   :  { %v520_v24 = vadd.s32 3, %v516_v49  ;;  %v657_v26 = vor.u32 %v656_v1, %v655_v2  ;;  %v663_v44 = vor.u32 %v662_v19, %v661_v8  ;;  %vm667_vm7 = vcmp.lt.s32.totalorder %v648_v29, 1 }
  0x9b   :  { %v512_v5 = vsel %vm429_vm10, %v511_v47, %v510_v4  ;;  %v594_v25 = vshll.u32 %v593_v0, 30  ;;  %v660_v46 = vor.u32 %v659_v50, %v658_v42  ;;  %vm668_vm8 = vcmp.lt.s32.totalorder %v648_v29, 2 }
  0x9c   :  { %v515_v10 = vsel %vm2497_vm5, %v2136_v17, %v512_v5  ;;  %v666_v11 = vor.u32 %v665_v43, %v664_v14  ;;  %vm669_vm9 = vcmp.lt.s32.totalorder %v648_v29, 3  ;;  %vm670_vm11 = vcmp.lt.s32.totalorder %v648_v29, 4 }
  0x9d   :  { %1964 = vcosq.f32 %v515_v10  ;;  %v2528_v27 = vsub.s32 %v591_v21, %v594_v25  ;;  %v651_v9 = vshrl.u32 %v2065_v32, %v650_v31  ;;  %v675_v3 = vsel %vm667_vm7, %v654_v7, %v657_v26 }
  0x9e   :  { %1966 = vsinq.f32 %v515_v10  ;;  %v672_v35 = vsel %vm670_vm11, %v660_v46, 2102212464  ;;  %v676_v22 = vsel %vm670_vm11, %v663_v44, 920167782  ;;  %v683_v23 = vshll.u32 %v643_v16, 8 }
  0x9f   :  { %v597_v41 = vsub.s32 0, %v2528_v27  ;;  %v617_v13 = vsub.s32 4, %v593_v0  ;;  %v677_v33 = vsel %vm669_vm9, %v660_v46, %v676_v22  ;;  %v521_v45 = vand.u32 3, %v520_v24 }
  0xa0   :  { %v678_v49 = vsel %vm668_vm8, %v675_v3, %v677_v33  ;;  %v679_v51 = vsel %vm667_vm7, %v657_v26, %v660_v46  ;;  %v680_v30 = vsel %vm670_vm11, %v666_v11, 1326507024  ;;  %v671_v21 = vsel %vm667_vm7, %v651_v9, %v654_v7 }
  0xa1   :  { %v1831_v18 = vmin.u32 %v597_v41, %v2528_v27  ;;  %v673_v31 = vsel %vm669_vm9, %v657_v26, %v672_v35  ;;  %v681_v37 = vsel %vm669_vm9, %v663_v44, %v680_v30  ;;  %vm533_vm10 = vcmp.lt.s32.totalorder %v2100_v52, 0 }
  0xa2   :  { %v682_v16 = vsel %vm668_vm8, %v679_v51, %v681_v37  ;;  %v2542_v2 = vmul.u32.u64.low %v683_v23, %v678_v49  ;;  %v2543_v8 = vmul.u32.u64.high %v683_v23, %v678_v49, %v2542_v2  ;;  %v618_v28 = vsel %vm533_vm10, %v617_v13, %v593_v0 }
  0xa3   :  { %v599_v4 = vclz %v1831_v18  ;;  %v739_v12 = vand.u32 2147483647, %v2104_v54  ;;  %v674_v42 = vsel %vm668_vm8, %v671_v21, %v673_v31  ;;  %v742_v19 = vand.u32 2139095040, %v2104_v54 }
  0xa4   :  { %v2549_v1 = vmul.u32.u64.low %v683_v23, %v682_v16  ;;  %v2550_v50 = vmul.u32.u64.high %v683_v23, %v682_v16, %v2549_v1  ;;  %vm519_vm12 = vweird.f32 %v2136_v17  ;;  %vm522_vm13 = vcmp.lt.s32.totalorder %v521_v45, 2 }
  0xa5   :  { %vm2556_vm14 = vcmp.le.f32.partialorder %v531_v20, 0.7853982  ;;  %v1832_v47 = vadd.s32 4294967294, %v599_v4  ;;  %vm523_vm0 = vcmp.eq.s32.totalorder %v521_v45, 0  ;;  %vm526_vm1 = vcmp.eq.s32.totalorder %v521_v45, 2 }
  0xa6   :  { %v693_v29 = vadd.s32 1, %v2543_v8  ;;  %v743_v0 = vshrl.u32 %v742_v19, 23  ;;  %v587_v43 = vadd.s32 %v2484_v39, %v2481_v15  ;;  %v620_v24 = vsel %vm2556_vm14, 0, %v618_v28 }
  0xa7   :  { %v1965_v7 = vpop.eup %1964  ;;  %vm1833_vm2 = vcmp.lt.s32.totalorder %v1832_v47, 0  ;;  %v690_v26 = vmul.u32 %v683_v23, %v674_v42  ;;  %vm692_vm15 = vc.u32 %v2550_v50, %v2542_v2  ;;  %v746_v25 = vand.u32 8388607, %v739_v12 }
  0xa8   :  { %v1967_v44 = vpop.eup %1966  ;;  %v527_v20 = vxor.u32 2147483648, %v1965_v7  ;;  %v602_v5 = vsel %vm1833_vm2, 0, %v1832_v47  ;;  %v694_v39 = vsel %vm692_vm15, %v693_v29, %v2543_v8  ;;  %v1838_v3 = vadd.s32 4294967169, %v743_v0 }
  0xa9   :  { %v524_v46 = vxor.u32 2147483648, %v1967_v44  ;;  %v603_v10 = vsub.s32 32, %v602_v5  ;;  %v604_v11 = vshll.u32 %v2528_v27, %v602_v5  ;;  %v607_v9 = vsub.s32 4294967266, %v602_v5 }
  0xaa   :  { %v528_v15 = vsel %vm526_vm1, %v527_v20, %v1967_v44  ;;  %v846_v35 = vand.u32 2139095040, %v2106_v55  ;;  %v695_v13 = vadd.s32 %v694_v39, %v690_v26  ;;  %v624_v49 = vadd.s32 3, %v620_v24 }
  0xab   :  { %v525_v22 = vsel %vm523_vm0, %v1965_v7, %v524_v46  ;;  %v605_v23 = vshrl.u32 %v587_v43, %v603_v10  ;;  %v608_v41 = vadd.s32 127, %v607_v9  ;;  %v749_v51 = vadd.s32 1, %v1838_v3 }
  0xac   :  { %v529_v33 = vsel %vm522_vm13, %v525_v22, %v528_v15  ;;  %v843_v30 = vand.u32 2147483647, %v2106_v55  ;;  %v696_v31 = vadd.s32 536870912, %v695_v13  ;;  %v747_v37 = vor.u32 8388608, %v746_v25 }
  0xad   :  { %v530_v27 = vsel %vm519_vm12, nan, %v529_v33  ;;  %v606_v18 = vor.u32 %v605_v23, %v604_v11  ;;  %v609_v21 = vshll.u32 %v608_v41, 23  ;;  %vm750_vm3 = vcmp.gt.s32.totalorder %v749_v51, 0 }
  0xae   :  { %v847_v16 = vshrl.u32 %v846_v35, 23  ;;  %1782 = vst [vmem:[#allocation5 + $0x18] sm:$0xff] %v530_v27  ;;  %v2577_v28 = vshrl.u32 %v696_v31, 30  ;;  %v751_v45 = vsel %vm750_vm3, %v749_v51, 0  ;;  %v2579_v19 = vand.u32 3, %v624_v49 }
  0xaf   :  { %v610_v8 = vor.u32 4788187, %v609_v21  ;;  %v613_v4 = vcvt.s32.f32 %v606_v18  ;;  %v753_v42 = vand.u32 31, %v751_v45  ;;  %v2584_v17 = vand.u32 8388607, %v843_v30 }
  0xb0   :  { %v698_v47 = vshll.u32 %v2577_v28, 30  ;;  %v691_v29 = vadd.s32 %v2542_v2, %v2550_v50  ;;  %v2587_v7 = vshll.u32 %v747_v37, 8  ;;  %v1842_v43 = vadd.s32 4294967169, %v847_v16 }
  0xb1   :  { %v611_v1 = vand.u32 2147483647, %v610_v8  ;;  %v754_v0 = vsub.s32 32, %v753_v42  ;;  %v756_v44 = vshll.u32 %v2065_v32, %v753_v42  ;;  %v759_v20 = vshll.u32 %v2066_v34, %v753_v42 }
  0xb2   :  { %v2589_v26 = vsub.s32 %v695_v13, %v698_v47  ;;  %v762_v46 = vshll.u32 %v2067_v36, %v753_v42  ;;  %v765_v10 = vshll.u32 %v2068_v38, %v753_v42  ;;  %v752_v11 = vshrl.u32 %v751_v45, 5 }
  0xb3   :  { %v614_v24 = vmul.f32 %v613_v4, %v611_v1  ;;  %v757_v5 = vshrl.u32 %v2066_v34, %v754_v0  ;;  %v760_v25 = vshrl.u32 %v2067_v36, %v754_v0  ;;  %v763_v9 = vshrl.u32 %v2068_v38, %v754_v0 }
  0xb4   :  { %v701_v50 = vsub.s32 0, %v2589_v26  ;;  %v755_v15 = vshrl.u32 %v2065_v32, %v754_v0  ;;  %v766_v39 = vshrl.u32 %v2069_v40, %v754_v0  ;;  %v768_v3 = vshll.u32 %v2069_v40, %v753_v42 }
  0xb5   :  { %v615_v2 = vxor.u32 2147483648, %v614_v24  ;;  %v851_v35 = vor.u32 8388608, %v2584_v17  ;;  %v758_v41 = vor.u32 %v757_v5, %v756_v44  ;;  %v761_v13 = vor.u32 %v760_v25, %v759_v20 }
  0xb6   :  { %v1835_v23 = vmin.u32 %v701_v50, %v2589_v26  ;;  %v764_v49 = vor.u32 %v763_v9, %v762_v46  ;;  %v767_v51 = vor.u32 %v766_v39, %v765_v10  ;;  %v769_v27 = vshrl.u32 %v2070_v48, %v754_v0 }
  0xb7   :  { %v616_v22 = vsel %vm533_vm10, %v615_v2, %v614_v24  ;;  %vm637_vm4 = vcmp.lt.s32.totalorder %v2102_v53, 0  ;;  %vm771_vm5 = vcmp.lt.s32.totalorder %v752_v11, 1  ;;  %v853_v21 = vadd.s32 1, %v1842_v43 }
  0xb8   :  { %v619_v33 = vsel %vm2556_vm14, %v2100_v52, %v616_v22  ;;  %v703_v18 = vclz %v1835_v23  ;;  %v721_v31 = vsub.s32 4, %v2577_v28  ;;  %v770_v37 = vor.u32 %v769_v27, %v768_v3 }
  0xb9   :  { %1968 = vcosq.f32 %v619_v33  ;;  %vm772_vm6 = vcmp.lt.s32.totalorder %v752_v11, 2  ;;  %vm773_vm7 = vcmp.lt.s32.totalorder %v752_v11, 3  ;;  %vm774_vm8 = vcmp.lt.s32.totalorder %v752_v11, 4 }
  0xba   :  { %1970 = vsinq.f32 %v619_v33  ;;  %v1836_v16 = vadd.s32 4294967294, %v703_v18  ;;  %v775_v14 = vsel %vm771_vm5, %v755_v15, %v758_v41  ;;  %v776_v8 = vsel %vm774_vm8, %v764_v49, 2102212464 }
  0xbb   :  { %v779_v4 = vsel %vm771_vm5, %v758_v41, %v761_v13  ;;  %v780_v45 = vsel %vm774_vm8, %v767_v51, 920167782  ;;  %v783_v42 = vsel %vm771_vm5, %v761_v13, %v764_v49  ;;  %vm2614_vm9 = vcmp.le.f32.partialorder %v635_v6, 0.7853982 }
  0xbc   :  { %vm1837_vm11 = vcmp.lt.s32.totalorder %v1836_v16, 0  ;;  %v777_v47 = vsel %vm773_vm7, %v761_v13, %v776_v8  ;;  %v781_v17 = vsel %vm773_vm7, %v764_v49, %v780_v45  ;;  %v784_v0 = vsel %vm774_vm8, %v770_v37, 1326507024 }
  0xbd   :  { %vm623_vm10 = vweird.f32 %v2100_v52  ;;  %v706_v43 = vsel %vm1837_vm11, 0, %v1836_v16  ;;  %v778_v24 = vsel %vm772_vm6, %v775_v14, %v777_v47  ;;  %v782_v44 = vsel %vm772_vm6, %v779_v4, %v781_v17 }
  0xbe   :  { %v785_v20 = vsel %vm773_vm7, %v767_v51, %v784_v0  ;;  %v707_v5 = vsub.s32 32, %v706_v43  ;;  %v708_v6 = vshll.u32 %v2589_v26, %v706_v43  ;;  %v711_v25 = vsub.s32 4294967266, %v706_v43 }
  0xbf   :  { %v786_v46 = vsel %vm772_vm6, %v783_v42, %v785_v20  ;;  %v2631_v50 = vmul.u32.u64.low %v2587_v7, %v782_v44  ;;  %v2632_v9 = vmul.u32.u64.high %v2587_v7, %v782_v44, %v2631_v50  ;;  %vm626_vm12 = vcmp.lt.s32.totalorder %v2579_v19, 2 }
  0xc0   :  { %v2627_v10 = vmul.u32.u64.low %v2587_v7, %v786_v46  ;;  %v2628_v2 = vmul.u32.u64.high %v2587_v7, %v786_v46, %v2627_v10  ;;  %v709_v15 = vshrl.u32 %v691_v29, %v707_v5  ;;  %v712_v39 = vadd.s32 127, %v711_v25 }
  0xc1   :  { %vm854_vm13 = vcmp.gt.s32.totalorder %v853_v21, 0  ;;  %vm627_vm14 = vcmp.eq.s32.totalorder %v2579_v19, 0  ;;  %vm630_vm0 = vcmp.eq.s32.totalorder %v2579_v19, 2  ;;  %v722_v26 = vsel %vm637_vm4, %v721_v31, %v2577_v28 }
  0xc2   :  { %v855_v11 = vsel %vm854_vm13, %v853_v21, 0  ;;  %v710_v22 = vor.u32 %v709_v15, %v708_v6  ;;  %v713_v23 = vshll.u32 %v712_v39, 23  ;;  %v794_v41 = vmul.u32 %v2587_v7, %v778_v24 }
  0xc3   :  { %v1969_v3 = vpop.eup %1968  ;;  %v857_v13 = vand.u32 31, %v855_v11  ;;  %vm796_vm1 = vc.u32 %v2628_v2, %v2631_v50  ;;  %v797_v29 = vadd.s32 1, %v2632_v9  ;;  %v2645_v51 = vshll.u32 %v851_v35, 8 }
  0xc4   :  { %v1971_v33 = vpop.eup %1970  ;;  %v631_v49 = vxor.u32 2147483648, %v1969_v3  ;;  %v714_v18 = vor.u32 4788187, %v713_v23  ;;  %v717_v37 = vcvt.s32.f32 %v710_v22  ;;  %v724_v7 = vsel %vm2614_vm9, 0, %v722_v26 }
  0xc5   :  { %v628_v27 = vxor.u32 2147483648, %v1971_v33  ;;  %v858_v28 = vsub.s32 32, %v857_v13  ;;  %v798_v31 = vsel %vm796_vm1, %v797_v29, %v2632_v9  ;;  %v947_v16 = vand.u32 2147483647, %v2108_v56 }
  0xc6   :  { %v632_v21 = vsel %vm630_vm0, %v631_v49, %v1971_v33  ;;  %v715_v8 = vand.u32 2147483647, %v714_v18  ;;  %v799_v35 = vadd.s32 %v798_v31, %v794_v41  ;;  %v860_v4 = vshll.u32 %v2065_v32, %v857_v13 }
  0xc7   :  { %v629_v14 = vsel %vm627_vm14, %v1969_v3, %v628_v27  ;;  %v861_v42 = vshrl.u32 %v2066_v34, %v858_v28  ;;  %v863_v47 = vshll.u32 %v2066_v34, %v857_v13  ;;  %v864_v17 = vshrl.u32 %v2067_v36, %v858_v28 }
  0xc8   :  { %v633_v45 = vsel %vm626_vm12, %v629_v14, %v632_v21  ;;  %v718_v43 = vmul.f32 %v717_v37, %v715_v8  ;;  %v800_v24 = vadd.s32 536870912, %v799_v35  ;;  %v856_v44 = vshrl.u32 %v855_v11, 5 }
  0xc9   :  { %v634_v0 = vsel %vm623_vm10, nan, %v633_v45  ;;  %v866_v20 = vshll.u32 %v2067_v36, %v857_v13  ;;  %v867_v5 = vshrl.u32 %v2068_v38, %v858_v28  ;;  %v869_v6 = vshll.u32 %v2068_v38, %v857_v13 }
  0xca   :  { %v870_v19 = vshrl.u32 %v2069_v40, %v858_v28  ;;  %1783 = vst [vmem:[#allocation5 + $0x20] sm:$0xff] %v634_v0  ;;  %v719_v25 = vxor.u32 2147483648, %v718_v43  ;;  %v728_v46 = vadd.s32 3, %v724_v7  ;;  %v801_v10 = vshrl.u32 %v800_v24, 30 }
  0xcb   :  { %v872_v9 = vshll.u32 %v2069_v40, %v857_v13  ;;  %vm741_vm2 = vcmp.lt.s32.totalorder %v2104_v54, 0  ;;  %v859_v52 = vshrl.u32 %v2065_v32, %v858_v28  ;;  %v862_v15 = vor.u32 %v861_v42, %v860_v4 }
  0xcc   :  { %v865_v39 = vor.u32 %v864_v17, %v863_v47  ;;  %v873_v26 = vshrl.u32 %v2070_v48, %v858_v28  ;;  %v720_v11 = vsel %vm637_vm4, %v719_v25, %v718_v43  ;;  %v802_v3 = vshll.u32 %v801_v10, 30 }
  0xcd   :  { %v871_v22 = vor.u32 %v870_v19, %v869_v6  ;;  %vm875_vm15 = vcmp.lt.s32.totalorder %v856_v44, 1  ;;  %v723_v23 = vsel %vm2614_vm9, %v2102_v53, %v720_v11  ;;  %v868_v41 = vor.u32 %v867_v5, %v866_v20 }
  0xce   :  { %v874_v13 = vor.u32 %v873_v26, %v872_v9  ;;  %vm878_vm3 = vcmp.lt.s32.totalorder %v856_v44, 4  ;;  %1972 = vcosq.f32 %v723_v23  ;;  %v2676_v33 = vsub.s32 %v799_v35, %v802_v3 }
  0xcf   :  { %vm877_vm5 = vcmp.lt.s32.totalorder %v856_v44, 3  ;;  %v950_v49 = vand.u32 2139095040, %v2108_v56  ;;  %1974 = vsinq.f32 %v723_v23  ;;  %vm876_vm6 = vcmp.lt.s32.totalorder %v856_v44, 2 }
  0xd0   :  { %v880_v29 = vsel %vm878_vm3, %v868_v41, 2102212464  ;;  %v883_v27 = vsel %vm875_vm15, %v862_v15, %v865_v39  ;;  %v729_v18 = vand.u32 3, %v728_v46  ;;  %v805_v37 = vsub.s32 0, %v2676_v33 }
  0xd1   :  { %v825_v1 = vsub.s32 4, %v801_v10  ;;  %v884_v28 = vsel %vm878_vm3, %v871_v22, 920167782  ;;  %v879_v21 = vsel %vm875_vm15, %v859_v52, %v862_v15  ;;  %v887_v31 = vsel %vm875_vm15, %v865_v39, %v868_v41 }
  0xd2   :  { %v885_v7 = vsel %vm877_vm5, %v868_v41, %v884_v28  ;;  %v888_v14 = vsel %vm878_vm3, %v874_v13, 1326507024  ;;  %v1839_v8 = vmin.u32 %v805_v37, %v2676_v33  ;;  %v881_v35 = vsel %vm877_vm5, %v865_v39, %v880_v29 }
  0xd3   :  { %v886_v4 = vsel %vm876_vm6, %v883_v27, %v885_v7  ;;  %v889_v45 = vsel %vm877_vm5, %v871_v22, %v888_v14  ;;  %v951_v0 = vshrl.u32 %v950_v49, 23  ;;  %vm727_vm4 = vweird.f32 %v2102_v53 }
  0xd4   :  { %v890_v42 = vsel %vm876_vm6, %v887_v31, %v889_v45  ;;  %v2693_v47 = vmul.u32.u64.low %v2645_v51, %v886_v4  ;;  %v2694_v17 = vmul.u32.u64.high %v2645_v51, %v886_v4, %v2693_v47  ;;  %vm2700_vm7 = vcmp.le.f32.partialorder %v739_v12, 0.7853982 }
  0xd5   :  { %v807_v24 = vclz %v1839_v8  ;;  %v826_v20 = vsel %vm741_vm2, %v825_v1, %v801_v10  ;;  %v882_v5 = vsel %vm876_vm6, %v879_v21, %v881_v35  ;;  %v1846_v25 = vadd.s32 4294967169, %v951_v0 }
  0xd6   :  { %v2708_v6 = vmul.u32.u64.low %v2645_v51, %v890_v42  ;;  %v2709_v19 = vmul.u32.u64.high %v2645_v51, %v890_v42, %v2708_v6  ;;  %vm730_vm8 = vcmp.lt.s32.totalorder %v729_v18, 2  ;;  %vm731_vm9 = vcmp.eq.s32.totalorder %v729_v18, 0 }
  0xd7   :  { %v1840_v46 = vadd.s32 4294967294, %v807_v24  ;;  %v1054_v9 = vand.u32 2139095040, %v2110_v57  ;;  %vm734_vm11 = vcmp.eq.s32.totalorder %v729_v18, 2  ;;  %v901_v12 = vadd.s32 1, %v2694_v17 }
  0xd8   :  { %v954_v52 = vand.u32 8388607, %v947_v16  ;;  %v957_v15 = vadd.s32 1, %v1846_v25  ;;  %v1973_v10 = vpop.eup %1972  ;;  %v795_v44 = vadd.s32 %v2631_v50, %v2628_v2  ;;  %v828_v39 = vsel %vm2700_vm7, 0, %v826_v20 }
  0xd9   :  { %vm1841_vm10 = vcmp.lt.s32.totalorder %v1840_v46, 0  ;;  %v898_v26 = vmul.u32 %v2645_v51, %v882_v5  ;;  %v1975_v11 = vpop.eup %1974  ;;  %v735_v3 = vxor.u32 2147483648, %v1973_v10  ;;  %vm900_vm12 = vc.u32 %v2709_v19, %v2693_v47 }
  0xda   :  { %v810_v22 = vsel %vm1841_vm10, 0, %v1840_v46  ;;  %v1055_v23 = vshrl.u32 %v1054_v9, 23  ;;  %v732_v41 = vxor.u32 2147483648, %v1975_v11  ;;  %v832_v50 = vadd.s32 3, %v828_v39 }
  0xdb   :  { %v811_v13 = vsub.s32 32, %v810_v22  ;;  %v812_v49 = vshll.u32 %v2676_v33, %v810_v22  ;;  %v815_v29 = vsub.s32 4294967266, %v810_v22  ;;  %v736_v2 = vsel %vm734_vm11, %v735_v3, %v1975_v11 }
  0xdc   :  { %v902_v27 = vsel %vm900_vm12, %v901_v12, %v2694_v17  ;;  %vm958_vm13 = vcmp.gt.s32.totalorder %v957_v15, 0  ;;  %v733_v51 = vsel %vm731_vm9, %v1973_v10, %v732_v41  ;;  %v1051_v31 = vand.u32 2147483647, %v2110_v57 }
  0xdd   :  { %v813_v37 = vshrl.u32 %v795_v44, %v811_v13  ;;  %v816_v1 = vadd.s32 127, %v815_v29  ;;  %v903_v28 = vadd.s32 %v902_v27, %v898_v26  ;;  %v737_v21 = vsel %vm730_vm8, %v733_v51, %v736_v2 }
  0xde   :  { %v959_v7 = vsel %vm958_vm13, %v957_v15, 0  ;;  %v1850_v14 = vadd.s32 4294967169, %v1055_v23  ;;  %v738_v33 = vsel %vm727_vm4, nan, %v737_v21  ;;  %v2730_v45 = vand.u32 3, %v832_v50 }
  0xdf   :  { %v814_v8 = vor.u32 %v813_v37, %v812_v49  ;;  %v817_v35 = vshll.u32 %v816_v1, 23  ;;  %v904_v4 = vadd.s32 536870912, %v903_v28  ;;  %v961_v42 = vand.u32 31, %v959_v7  ;;  %1784 = vst [vmem:[#allocation5 + $0x28] sm:$0xff] %v738_v33 }
  0xe0   :  { %v955_v18 = vor.u32 8388608, %v954_v52  ;;  %v2734_v20 = vshrl.u32 %v959_v7, 5  ;;  %v2738_v6 = vand.u32 8388607, %v1051_v31  ;;  %v1061_v53 = vadd.s32 1, %v1850_v14 }
  0xe1   :  { %v818_v17 = vor.u32 4788187, %v817_v35  ;;  %v821_v0 = vcvt.s32.f32 %v814_v8  ;;  %v2732_v24 = vshrl.u32 %v904_v4, 30  ;;  %v962_v5 = vsub.s32 32, %v961_v42 }
  0xe2   :  { %v964_v9 = vshll.u32 %v2065_v32, %v961_v42  ;;  %v967_v12 = vshll.u32 %v2066_v34, %v961_v42  ;;  %v970_v52 = vshll.u32 %v2067_v36, %v961_v42  ;;  %v973_v11 = vshll.u32 %v2068_v38, %v961_v42 }
  0xe3   :  { %v819_v25 = vand.u32 2147483647, %v818_v17  ;;  %v906_v46 = vshll.u32 %v2732_v24, 30  ;;  %v965_v15 = vshrl.u32 %v2066_v34, %v962_v5  ;;  %v968_v10 = vshrl.u32 %v2067_v36, %v962_v5 }
  0xe4   :  { %v971_v44 = vshrl.u32 %v2068_v38, %v962_v5  ;;  %v974_v3 = vshrl.u32 %v2069_v40, %v962_v5  ;;  %v899_v22 = vadd.s32 %v2693_v47, %v2709_v19  ;;  %v2753_v23 = vshll.u32 %v955_v18, 8 }
  0xe5   :  { %v822_v39 = vmul.f32 %v821_v0, %v819_v25  ;;  %v2747_v26 = vsub.s32 %v903_v28, %v906_v46  ;;  %v1059_v41 = vor.u32 8388608, %v2738_v6  ;;  %vm1062_vm14 = vcmp.gt.s32.totalorder %v1061_v53, 0 }
  0xe6   :  { %v963_v29 = vshrl.u32 %v2065_v32, %v962_v5  ;;  %v966_v2 = vor.u32 %v965_v15, %v964_v9  ;;  %v969_v50 = vor.u32 %v968_v10, %v967_v12  ;;  %v972_v27 = vor.u32 %v971_v44, %v970_v52 }
  0xe7   :  { %v823_v13 = vxor.u32 2147483648, %v822_v39  ;;  %v909_v49 = vsub.s32 0, %v2747_v26  ;;  %v976_v51 = vshll.u32 %v2069_v40, %v961_v42  ;;  %v977_v37 = vshrl.u32 %v2070_v48, %v962_v5 }
  0xe8   :  { %vm845_vm0 = vcmp.lt.s32.totalorder %v2106_v55, 0  ;;  %v975_v1 = vor.u32 %v974_v3, %v973_v11  ;;  %vm979_vm1 = vcmp.lt.s32.totalorder %v2734_v20, 1  ;;  %vm982_vm15 = vcmp.lt.s32.totalorder %v2734_v20, 4 }
  0xe9   :  { %v824_v47 = vsel %vm741_vm2, %v823_v13, %v822_v39  ;;  %v1843_v19 = vmin.u32 %v909_v49, %v2747_v26  ;;  %v978_v21 = vor.u32 %v977_v37, %v976_v51  ;;  %v1063_v7 = vsel %vm1062_vm14, %v1061_v53, 0 }
  0xea   :  { %v827_v28 = vsel %vm2700_vm7, %v2104_v54, %v824_v47  ;;  %vm981_vm2 = vcmp.lt.s32.totalorder %v2734_v20, 3  ;;  %v983_v33 = vsel %vm979_vm1, %v963_v29, %v966_v2  ;;  %vm980_vm3 = vcmp.lt.s32.totalorder %v2734_v20, 2 }
  0xeb   :  { %1976 = vcosq.f32 %v827_v28  ;;  %v911_v14 = vclz %v1843_v19  ;;  %v984_v8 = vsel %vm982_vm15, %v972_v27, 2102212464  ;;  %v987_v43 = vsel %vm979_vm1, %v966_v2, %v969_v50 }
  0xec   :  { %1978 = vsinq.f32 %v827_v28  ;;  %vm838_vm5 = vcmp.eq.s32.totalorder %v2730_v45, 2  ;;  %v985_v4 = vsel %vm981_vm2, %v969_v50, %v984_v8  ;;  %v988_v42 = vsel %vm982_vm15, %v975_v1, 920167782 }
  0xed   :  { %v1844_v35 = vadd.s32 4294967294, %v911_v14  ;;  %v991_v17 = vsel %vm979_vm1, %v969_v50, %v972_v27  ;;  %vm835_vm6 = vcmp.eq.s32.totalorder %v2730_v45, 0  ;;  %v929_v0 = vsub.s32 4, %v2732_v24 }
  0xee   :  { %v986_v18 = vsel %vm980_vm3, %v983_v33, %v985_v4  ;;  %v989_v5 = vsel %vm981_vm2, %v972_v27, %v988_v42  ;;  %v992_v53 = vsel %vm982_vm15, %v978_v21, 1326507024  ;;  %vm834_vm4 = vcmp.lt.s32.totalorder %v2730_v45, 2 }
  0xef   :  { %vm1845_vm7 = vcmp.lt.s32.totalorder %v1844_v35, 0  ;;  %v990_v25 = vsel %vm980_vm3, %v987_v43, %v989_v5  ;;  %v993_v46 = vsel %vm981_vm2, %v975_v1, %v992_v53  ;;  %v2798_v9 = vshrl.u32 %v1063_v7, 5 }
  0xf0   :  { %vm831_vm8 = vweird.f32 %v2104_v54  ;;  %v914_v12 = vsel %vm1845_vm7, 0, %v1844_v35  ;;  %v994_v15 = vsel %vm980_vm3, %v991_v17, %v993_v46  ;;  %v1065_v3 = vand.u32 31, %v1063_v7 }
  0xf1   :  { %v2804_v10 = vmul.u32.u64.low %v2753_v23, %v990_v25  ;;  %v2805_v52 = vmul.u32.u64.high %v2753_v23, %v990_v25, %v2804_v10  ;;  %v915_v44 = vsub.s32 32, %v914_v12  ;;  %v916_v39 = vshll.u32 %v2747_v26, %v914_v12 }
  0xf2   :  { %v919_v11 = vsub.s32 4294967266, %v914_v12  ;;  %v2812_v13 = vsel %vm845_vm0, %v929_v0, %v2732_v24  ;;  %v2815_v49 = vmul.u32.u64.low %v2753_v23, %v994_v15  ;;  %v2816_v29 = vmul.u32.u64.high %v2753_v23, %v994_v15, %v2815_v49 }
  0xf3   :  { %v1002_v20 = vmul.u32 %v2753_v23, %v986_v18  ;;  %v917_v2 = vshrl.u32 %v899_v22, %v915_v44  ;;  %v1066_v27 = vsub.s32 32, %v1065_v3  ;;  %vm1083_vm9 = vcmp.lt.s32.totalorder %v2798_v9, 1 }
  0xf4   :  { %v920_v50 = vadd.s32 127, %v919_v11  ;;  %v1005_v26 = vadd.s32 1, %v2805_v52  ;;  %v1068_v51 = vshll.u32 %v2065_v32, %v1065_v3  ;;  %v1071_v37 = vshll.u32 %v2066_v34, %v1065_v3 }
  0xf5   :  { %v1074_v24 = vshll.u32 %v2067_v36, %v1065_v3  ;;  %v1977_v47 = vpop.eup %1976  ;;  %vm2826_vm11 = vcmp.le.f32.partialorder %v843_v30, 0.7853982  ;;  %v918_v22 = vor.u32 %v917_v2, %v916_v39  ;;  %v1069_v1 = vshrl.u32 %v2066_v34, %v1066_v27 }
  0xf6   :  { %v921_v23 = vshll.u32 %v920_v50, 23  ;;  %v1077_v28 = vshll.u32 %v2068_v38, %v1065_v3  ;;  %v1979_v21 = vpop.eup %1978  ;;  %v839_v7 = vxor.u32 2147483648, %v1977_v47  ;;  %vm1004_vm10 = vc.u32 %v2816_v29, %v2804_v10 }
  0xf7   :  { %v1067_v14 = vshrl.u32 %v2065_v32, %v1066_v27  ;;  %v1072_v33 = vshrl.u32 %v2067_v36, %v1066_v27  ;;  %v836_v8 = vxor.u32 2147483648, %v1979_v21  ;;  %v925_v43 = vcvt.s32.f32 %v918_v22 }
  0xf8   :  { %v922_v30 = vor.u32 4788187, %v921_v23  ;;  %v1006_v35 = vsel %vm1004_vm10, %v1005_v26, %v2805_v52  ;;  %v840_v4 = vsel %vm838_vm5, %v839_v7, %v1979_v21  ;;  %v1070_v17 = vor.u32 %v1069_v1, %v1068_v51 }
  0xf9   :  { %v1007_v42 = vadd.s32 %v1006_v35, %v1002_v20  ;;  %v1073_v0 = vor.u32 %v1072_v33, %v1071_v37  ;;  %v837_v18 = vsel %vm835_vm6, %v1977_v47, %v836_v8  ;;  %v1075_v53 = vshrl.u32 %v2068_v38, %v1066_v27 }
  0xfa   :  { %v923_v5 = vand.u32 2147483647, %v922_v30  ;;  %v1078_v25 = vshrl.u32 %v2069_v40, %v1066_v27  ;;  %v841_v46 = vsel %vm834_vm4, %v837_v18, %v840_v4  ;;  %v1080_v15 = vshll.u32 %v2069_v40, %v1065_v3 }
  0xfb   :  { %v1008_v12 = vadd.s32 536870912, %v1007_v42  ;;  %v1081_v52 = vshrl.u32 %v2070_v48, %v1066_v27  ;;  %v842_v44 = vsel %vm831_vm8, nan, %v841_v46  ;;  %v1076_v11 = vor.u32 %v1075_v53, %v1074_v24 }
  0xfc   :  { %v926_v39 = vmul.f32 %v925_v43, %v923_v5  ;;  %v1079_v49 = vor.u32 %v1078_v25, %v1077_v28  ;;  %vm1084_vm12 = vcmp.lt.s32.totalorder %v2798_v9, 2  ;;  %vm1085_vm13 = vcmp.lt.s32.totalorder %v2798_v9, 3  ;;  %1785 = vst [vmem:[#allocation5 + $0x30] sm:$0xff] %v842_v44 }
  0xfd   :  { %v1009_v20 = vshrl.u32 %v1008_v12, 30  ;;  %vm1086_vm14 = vcmp.lt.s32.totalorder %v2798_v9, 4  ;;  %v1082_v2 = vor.u32 %v1081_v52, %v1080_v15  ;;  %v1091_v54 = vsel %vm1083_vm9, %v1070_v17, %v1073_v0 }
  0xfe   :  { %v927_v45 = vxor.u32 2147483648, %v926_v39  ;;  %v1088_v3 = vsel %vm1086_vm14, %v1076_v11, 2102212464  ;;  %v932_v50 = vsel %vm2826_vm11, 0, %v2812_v13  ;;  %v1092_v26 = vsel %vm1086_vm14, %v1079_v49, 920167782 }
  0xff   :  { %v1010_v27 = vshll.u32 %v1009_v20, 30  ;;  %v1099_v51 = vshll.u32 %v1059_v41, 8  ;;  %v1087_v24 = vsel %vm1083_vm9, %v1067_v14, %v1070_v17  ;;  %v1089_v47 = vsel %vm1085_vm13, %v1073_v0, %v1088_v3 }
 0x100   :  { %v928_v37 = vsel %vm845_vm0, %v927_v45, %v926_v39  ;;  %v1093_v22 = vsel %vm1085_vm13, %v1076_v11, %v1092_v26  ;;  %v1095_v41 = vsel %vm1083_vm9, %v1073_v0, %v1076_v11  ;;  %v936_v1 = vadd.s32 3, %v932_v50 }
 0x101   :  { %v931_v13 = vsel %vm2826_vm11, %v2106_v55, %v928_v37  ;;  %v1011_v23 = vsub.s32 %v1007_v42, %v1010_v27  ;;  %v1094_v6 = vsel %vm1084_vm12, %v1091_v54, %v1093_v22  ;;  %v1033_v28 = vsub.s32 4, %v1009_v20 }
 0x102   :  { %1980 = vcosq.f32 %v931_v13  ;;  %v1096_v21 = vsel %vm1086_vm14, %v1082_v2, 1326507024  ;;  %v1090_v19 = vsel %vm1084_vm12, %v1087_v24, %v1089_v47  ;;  %vm949_vm0 = vcmp.lt.s32.totalorder %v2108_v56, 0 }
 0x103   :  { %1982 = vsinq.f32 %v931_v13  ;;  %v1013_v7 = vsub.s32 0, %v1011_v23  ;;  %v1097_v14 = vsel %vm1085_vm13, %v1079_v49, %v1096_v21  ;;  %v937_v42 = vand.u32 3, %v936_v1 }
 0x104   :  { %v1098_v33 = vsel %vm1084_vm12, %v1095_v41, %v1097_v14  ;;  %v2886_v8 = vmul.u32.u64.low %v1099_v51, %v1094_v6  ;;  %v2887_v30 = vmul.u32.u64.high %v1099_v51, %v1094_v6, %v2886_v8  ;;  %v1034_v17 = vsel %vm949_vm0, %v1033_v28, %v1009_v20 }
 0x105   :  { %v1847_v43 = vmin.u32 %v1013_v7, %v1011_v23  ;;  %v2890_v35 = vmul.u32.u64.low %v1099_v51, %v1098_v33  ;;  %v2891_v4 = vmul.u32.u64.high %v1099_v51, %v1098_v33, %v2890_v35  ;;  %v1158_v0 = vand.u32 2139095040, %v2112_v58 }
 0x106   :  { %v1106_v5 = vmul.u32 %v1099_v51, %v1090_v19  ;;  %vm2898_vm1 = vcmp.le.f32.partialorder %v947_v16, 0.7853982  ;;  %v1109_v53 = vadd.s32 1, %v2887_v30  ;;  %vm935_vm15 = vweird.f32 %v2106_v55 }
 0x107   :  { %v1015_v18 = vclz %v1847_v43  ;;  %v1159_v25 = vshrl.u32 %v1158_v0, 23  ;;  %v1036_v12 = vsel %vm2898_vm1, 0, %v1034_v17  ;;  %vm1108_vm2 = vc.u32 %v2891_v4, %v2886_v8 }
 0x108   :  { %vm938_vm3 = vcmp.lt.s32.totalorder %v937_v42, 2  ;;  %v1110_v15 = vsel %vm1108_vm2, %v1109_v53, %v2887_v30  ;;  %v1155_v52 = vand.u32 2147483647, %v2112_v58  ;;  %vm939_vm5 = vcmp.eq.s32.totalorder %v937_v42, 0 }
 0x109   :  { %v1848_v46 = vadd.s32 4294967294, %v1015_v18  ;;  %v1854_v16 = vadd.s32 4294967169, %v1159_v25  ;;  %v1003_v44 = vadd.s32 %v2804_v10, %v2816_v29  ;;  %v1111_v39 = vadd.s32 %v1110_v15, %v1106_v5 }
 0x10a   :  { %vm942_vm4 = vcmp.eq.s32.totalorder %v937_v42, 2  ;;  %v1040_v20 = vadd.s32 3, %v1036_v12  ;;  %v1162_v37 = vand.u32 8388607, %v1155_v52  ;;  %v1262_v41 = vand.u32 2139095040, %v2114_v59 }
 0x10b   :  { %vm1849_vm6 = vcmp.lt.s32.totalorder %v1848_v46, 0  ;;  %v1165_v45 = vadd.s32 1, %v1854_v16  ;;  %v1112_v51 = vadd.s32 536870912, %v1111_v39  ;;  %v1107_v43 = vadd.s32 %v2886_v8, %v2891_v4 }
 0x10c   :  { %v1981_v11 = vpop.eup %1980  ;;  %v1018_v49 = vsel %vm1849_vm6, 0, %v1848_v46  ;;  %v2920_v7 = vand.u32 3, %v1040_v20  ;;  %v1163_v35 = vor.u32 8388608, %v1162_v37  ;;  %v1263_v18 = vshrl.u32 %v1262_v41, 23 }
 0x10d   :  { %v1983_v2 = vpop.eup %1982  ;;  %v943_v3 = vxor.u32 2147483648, %v1981_v11  ;;  %v1019_v54 = vsub.s32 32, %v1018_v49  ;;  %v1020_v50 = vshll.u32 %v1011_v23, %v1018_v49  ;;  %v1023_v27 = vsub.s32 4294967266, %v1018_v49 }
 0x10e   :  { %v940_v26 = vxor.u32 2147483648, %v1983_v2  ;;  %vm1166_vm7 = vcmp.gt.s32.totalorder %v1165_v45, 0  ;;  %v2914_v13 = vshrl.u32 %v1112_v51, 30  ;;  %v1259_v25 = vand.u32 2147483647, %v2114_v59 }
 0x10f   :  { %v944_v24 = vsel %vm942_vm4, %v943_v3, %v1983_v2  ;;  %v1021_v10 = vshrl.u32 %v1003_v44, %v1019_v54  ;;  %v1024_v29 = vadd.s32 127, %v1023_v27  ;;  %v1167_v47 = vsel %vm1166_vm7, %v1165_v45, 0 }
 0x110   :  { %v941_v22 = vsel %vm939_vm5, %v1981_v11, %v940_v26  ;;  %v1169_v6 = vand.u32 31, %v1167_v47  ;;  %v1114_v14 = vshll.u32 %v2914_v13, 30  ;;  %v1168_v12 = vshrl.u32 %v1167_v47, 5 }
 0x111   :  { %v945_v23 = vsel %vm938_vm3, %v941_v22, %v944_v24  ;;  %v1022_v1 = vor.u32 %v1021_v10, %v1020_v50  ;;  %v1025_v28 = vshll.u32 %v1024_v29, 23  ;;  %vm1053_vm8 = vcmp.lt.s32.totalorder %v2110_v57, 0 }
 0x112   :  { %v946_v21 = vsel %vm935_vm15, nan, %v945_v23  ;;  %v1170_v19 = vsub.s32 32, %v1169_v6  ;;  %v2924_v17 = vsub.s32 %v1111_v39, %v1114_v14  ;;  %v1172_v42 = vshll.u32 %v2065_v32, %v1169_v6 }
 0x113   :  { %v1026_v33 = vor.u32 4788187, %v1025_v28  ;;  %v1029_v30 = vcvt.s32.f32 %v1022_v1  ;;  %1786 = vst [vmem:[#allocation5 + $0x38] sm:$0xff] %v946_v21  ;;  %v1175_v5 = vshll.u32 %v2066_v34, %v1169_v6  ;;  %v1178_v8 = vshll.u32 %v2067_v36, %v1169_v6 }
 0x114   :  { %v1173_v0 = vshrl.u32 %v2066_v34, %v1170_v19  ;;  %v1176_v53 = vshrl.u32 %v2067_v36, %v1170_v19  ;;  %v1117_v46 = vsub.s32 0, %v2924_v17  ;;  %v1179_v4 = vshrl.u32 %v2068_v38, %v1170_v19 }
 0x115   :  { %v1027_v55 = vand.u32 2147483647, %v1026_v33  ;;  %v1181_v16 = vshll.u32 %v2068_v38, %v1169_v6  ;;  %v1182_v44 = vshrl.u32 %v2069_v40, %v1170_v19  ;;  %v2936_v39 = vshll.u32 %v1163_v35, 8 }
 0x116   :  { %v1851_v11 = vmin.u32 %v1117_v46, %v2924_v17  ;;  %v1174_v49 = vor.u32 %v1173_v0, %v1172_v42  ;;  %v1184_v20 = vshll.u32 %v2069_v40, %v1169_v6  ;;  %v1858_v45 = vadd.s32 4294967169, %v1263_v18 }
 0x117   :  { %v1030_v15 = vmul.f32 %v1029_v30, %v1027_v55  ;;  %v1177_v3 = vor.u32 %v1176_v53, %v1175_v5  ;;  %v1183_v54 = vor.u32 %v1182_v44, %v1181_v16  ;;  %v1185_v50 = vshrl.u32 %v2070_v48, %v1170_v19 }
 0x118   :  { %v1119_v27 = vclz %v1851_v11  ;;  %v1171_v26 = vshrl.u32 %v2065_v32, %v1170_v19  ;;  %v1180_v51 = vor.u32 %v1179_v4, %v1178_v8  ;;  %vm1187_vm9 = vcmp.lt.s32.totalorder %v1168_v12, 1 }
 0x119   :  { %v1031_v2 = vxor.u32 2147483648, %v1030_v15  ;;  %v1137_v24 = vsub.s32 4, %v2914_v13  ;;  %v1186_v10 = vor.u32 %v1185_v50, %v1184_v20  ;;  %vm1189_vm11 = vcmp.lt.s32.totalorder %v1168_v12, 3 }
 0x11a   :  { %v1852_v47 = vadd.s32 4294967294, %v1119_v27  ;;  %vm1188_vm10 = vcmp.lt.s32.totalorder %v1168_v12, 2  ;;  %vm1190_vm12 = vcmp.lt.s32.totalorder %v1168_v12, 4  ;;  %v1195_v6 = vsel %vm1187_vm9, %v1174_v49, %v1177_v3 }
 0x11b   :  { %v1032_v37 = vsel %vm949_vm0, %v1031_v2, %v1030_v15  ;;  %v1192_v22 = vsel %vm1190_vm12, %v1180_v51, 2102212464  ;;  %v1196_v41 = vsel %vm1190_vm12, %v1183_v54, 920167782  ;;  %v1191_v23 = vsel %vm1187_vm9, %v1171_v26, %v1174_v49 }
 0x11c   :  { %v1035_v29 = vsel %vm2898_vm1, %v2108_v56, %v1032_v37  ;;  %vm1853_vm13 = vcmp.lt.s32.totalorder %v1852_v47, 0  ;;  %v1197_v1 = vsel %vm1189_vm11, %v1180_v51, %v1196_v41  ;;  %v1193_v9 = vsel %vm1189_vm11, %v1177_v3, %v1192_v22 }
 0x11d   :  { %1984 = vcosq.f32 %v1035_v29  ;;  %v1122_v28 = vsel %vm1853_vm13, 0, %v1852_v47  ;;  %v1198_v21 = vsel %vm1188_vm10, %v1195_v6, %v1197_v1  ;;  %v1199_v14 = vsel %vm1187_vm9, %v1177_v3, %v1180_v51 }
 0x11e   :  { %1986 = vsinq.f32 %v1035_v29  ;;  %v1123_v19 = vsub.s32 32, %v1122_v28  ;;  %v1124_v33 = vshll.u32 %v2924_v17, %v1122_v28  ;;  %v1127_v30 = vsub.s32 4294967266, %v1122_v28 }
 0x11f   :  { %v1200_v35 = vsel %vm1190_vm12, %v1186_v10, 1326507024  ;;  %v1138_v42 = vsel %vm1053_vm8, %v1137_v24, %v2914_v13  ;;  %v2964_v18 = vmul.u32.u64.low %v2936_v39, %v1198_v21  ;;  %v2965_v55 = vmul.u32.u64.high %v2936_v39, %v1198_v21, %v2964_v18 }
 0x120   :  { %v1201_v0 = vsel %vm1189_vm11, %v1183_v54, %v1200_v35  ;;  %v1125_v5 = vshrl.u32 %v1107_v43, %v1123_v19  ;;  %v1128_v53 = vadd.s32 127, %v1127_v30  ;;  %v1194_v46 = vsel %vm1188_vm10, %v1191_v23, %v1193_v9 }
 0x121   :  { %v1202_v17 = vsel %vm1188_vm10, %v1199_v14, %v1201_v0  ;;  %vm1039_vm14 = vweird.f32 %v2108_v56  ;;  %v1269_v13 = vadd.s32 1, %v1858_v45  ;;  %vm2977_vm0 = vcmp.le.f32.partialorder %v1051_v31, 0.7853982 }
 0x122   :  { %v2972_v8 = vmul.u32.u64.low %v2936_v39, %v1202_v17  ;;  %v2973_v4 = vmul.u32.u64.high %v2936_v39, %v1202_v17, %v2972_v8  ;;  %v1126_v16 = vor.u32 %v1125_v5, %v1124_v33  ;;  %v1129_v43 = vshll.u32 %v1128_v53, 23 }
 0x123   :  { %v2983_v44 = vand.u32 8388607, %v1259_v25  ;;  %v1140_v12 = vsel %vm2977_vm0, 0, %v1138_v42  ;;  %v1210_v11 = vmul.u32 %v2936_v39, %v1194_v46  ;;  %v1213_v49 = vadd.s32 1, %v2965_v55 }
 0x124   :  { %vm1270_vm1 = vcmp.gt.s32.totalorder %v1269_v13, 0  ;;  %vm1042_vm15 = vcmp.lt.s32.totalorder %v2920_v7, 2  ;;  %v1130_v31 = vor.u32 4788187, %v1129_v43  ;;  %v1133_v20 = vcvt.s32.f32 %v1126_v16 }
 0x125   :  { %v1271_v45 = vsel %vm1270_vm1, %v1269_v13, 0  ;;  %vm1043_vm2 = vcmp.eq.s32.totalorder %v2920_v7, 0  ;;  %vm1046_vm3 = vcmp.eq.s32.totalorder %v2920_v7, 2  ;;  %vm1212_vm5 = vc.u32 %v2973_v4, %v2964_v18 }
 0x126   :  { %v1273_v3 = vand.u32 31, %v1271_v45  ;;  %v1131_v39 = vand.u32 2147483647, %v1130_v31  ;;  %v1144_v27 = vadd.s32 3, %v1140_v12  ;;  %v1214_v26 = vsel %vm1212_vm5, %v1213_v49, %v2965_v55 }
 0x127   :  { %v1985_v2 = vpop.eup %1984  ;;  %v1215_v37 = vadd.s32 %v1214_v26, %v1210_v11  ;;  %v1267_v24 = vor.u32 8388608, %v2983_v44  ;;  %v2996_v22 = vshrl.u32 %v1271_v45, 5  ;;  %v1366_v5 = vand.u32 2139095040, %v2116_v60 }
 0x128   :  { %v1987_v54 = vpop.eup %1986  ;;  %v1047_v50 = vxor.u32 2147483648, %v1985_v2  ;;  %v1274_v10 = vsub.s32 32, %v1273_v3  ;;  %v1134_v47 = vmul.f32 %v1133_v20, %v1131_v39  ;;  %v1276_v6 = vshll.u32 %v2065_v32, %v1273_v3 }
 0x129   :  { %v1044_v51 = vxor.u32 2147483648, %v1987_v54  ;;  %v1216_v23 = vadd.s32 536870912, %v1215_v37  ;;  %v1279_v28 = vshll.u32 %v2066_v34, %v1273_v3  ;;  %v1282_v19 = vshll.u32 %v2067_v36, %v1273_v3 }
 0x12a   :  { %v1048_v29 = vsel %vm1046_vm3, %v1047_v50, %v1987_v54  ;;  %v1277_v1 = vshrl.u32 %v2066_v34, %v1274_v10  ;;  %v1135_v21 = vxor.u32 2147483648, %v1134_v47  ;;  %v1280_v14 = vshrl.u32 %v2067_v36, %v1274_v10 }
 0x12b   :  { %v1045_v41 = vsel %vm1043_vm2, %v1985_v2, %v1044_v51  ;;  %v3009_v30 = vshrl.u32 %v1216_v23, 30  ;;  %v1283_v35 = vshrl.u32 %v2068_v38, %v1274_v10  ;;  %v1285_v42 = vshll.u32 %v2068_v38, %v1273_v3 }
 0x12c   :  { %v1049_v9 = vsel %vm1042_vm15, %v1045_v41, %v1048_v29  ;;  %v1136_v0 = vsel %vm1053_vm8, %v1135_v21, %v1134_v47  ;;  %v1275_v7 = vshrl.u32 %v2065_v32, %v1274_v10  ;;  %v1286_v55 = vshrl.u32 %v2069_v40, %v1274_v10 }
 0x12d   :  { %v1050_v33 = vsel %vm1039_vm14, nan, %v1049_v9  ;;  %v1139_v56 = vsel %vm2977_vm0, %v2110_v57, %v1136_v0  ;;  %v1218_v53 = vshll.u32 %v3009_v30, 30  ;;  %v1278_v46 = vor.u32 %v1277_v1, %v1276_v6 }
 0x12e   :  { %1787 = vst [vmem:[#allocation5 + $0x40] sm:$0xff] %v1050_v33  ;;  %v1288_v17 = vshll.u32 %v2069_v40, %v1273_v3  ;;  %1988 = vcosq.f32 %v1139_v56  ;;  %v1281_v8 = vor.u32 %v1280_v14, %v1279_v28  ;;  %v1287_v13 = vor.u32 %v1286_v55, %v1285_v42 }
 0x12f   :  { %v1289_v16 = vshrl.u32 %v2070_v48, %v1274_v10  ;;  %1990 = vsinq.f32 %v1139_v56  ;;  %v3024_v43 = vsub.s32 %v1215_v37, %v1218_v53  ;;  %v1284_v44 = vor.u32 %v1283_v35, %v1282_v19 }
 0x130   :  { %vm1291_vm6 = vcmp.lt.s32.totalorder %v2996_v22, 1  ;;  %vm1293_vm4 = vcmp.lt.s32.totalorder %v2996_v22, 3  ;;  %vm1294_vm7 = vcmp.lt.s32.totalorder %v2996_v22, 4  ;;  %v1367_v15 = vshrl.u32 %v1366_v5, 23 }
 0x131   :  { %v1290_v12 = vor.u32 %v1289_v16, %v1288_v17  ;;  %v1145_v11 = vand.u32 3, %v1144_v27  ;;  %v1221_v49 = vsub.s32 0, %v3024_v43  ;;  %vm1292_vm8 = vcmp.lt.s32.totalorder %v2996_v22, 2 }
 0x132   :  { %v1296_v31 = vsel %vm1294_vm7, %v1284_v44, 2102212464  ;;  %v1299_v20 = vsel %vm1291_vm6, %v1278_v46, %v1281_v8  ;;  %v1300_v45 = vsel %vm1294_vm7, %v1287_v13, 920167782  ;;  %v1307_v2 = vshll.u32 %v1267_v24, 8 }
 0x133   :  { %v1363_v3 = vand.u32 2147483647, %v2116_v60  ;;  %vm1143_vm9 = vweird.f32 %v2110_v57  ;;  %vm1157_vm11 = vcmp.lt.s32.totalorder %v2112_v58, 0  ;;  %v1855_v54 = vmin.u32 %v1221_v49, %v3024_v43 }
 0x134   :  { %v1295_v50 = vsel %vm1291_vm6, %v1275_v7, %v1278_v46  ;;  %v1297_v39 = vsel %vm1293_vm4, %v1281_v8, %v1296_v31  ;;  %v1301_v27 = vsel %vm1293_vm4, %v1284_v44, %v1300_v45  ;;  %v1303_v51 = vsel %vm1291_vm6, %v1281_v8, %v1284_v44 }
 0x135   :  { %v1302_v26 = vsel %vm1292_vm8, %v1299_v20, %v1301_v27  ;;  %v1304_v37 = vsel %vm1294_vm7, %v1290_v12, 1326507024  ;;  %v1862_v24 = vadd.s32 4294967169, %v1367_v15  ;;  %vm1146_vm10 = vcmp.lt.s32.totalorder %v1145_v11, 2 }
 0x136   :  { %vm1147_vm12 = vcmp.eq.s32.totalorder %v1145_v11, 0  ;;  %vm1150_vm13 = vcmp.eq.s32.totalorder %v1145_v11, 2  ;;  %v1223_v10 = vclz %v1855_v54  ;;  %v1298_v29 = vsel %vm1292_vm8, %v1295_v50, %v1297_v39 }
 0x137   :  { %v1305_v47 = vsel %vm1293_vm4, %v1287_v13, %v1304_v37  ;;  %v3057_v6 = vmul.u32.u64.low %v1307_v2, %v1302_v26  ;;  %v3058_v41 = vmul.u32.u64.high %v1307_v2, %v1302_v26, %v3057_v6  ;;  %v3065_v28 = vand.u32 8388607, %v1363_v3 }
 0x138   :  { %v1856_v23 = vadd.s32 4294967294, %v1223_v10  ;;  %v1306_v1 = vsel %vm1292_vm8, %v1303_v51, %v1305_v47  ;;  %v1373_v9 = vadd.s32 1, %v1862_v24  ;;  %v1989_v21 = vpop.eup %1988  ;;  %v1211_v14 = vadd.s32 %v2964_v18, %v2973_v4 }
 0x139   :  { %v1241_v19 = vsub.s32 4, %v3009_v30  ;;  %v3070_v33 = vmul.u32.u64.low %v1307_v2, %v1306_v1  ;;  %v3071_v35 = vmul.u32.u64.high %v1307_v2, %v1306_v1, %v3070_v33  ;;  %v1991_v42 = vpop.eup %1990  ;;  %v1151_v0 = vxor.u32 2147483648, %v1989_v21 }
 0x13a   :  { %vm1857_vm14 = vcmp.lt.s32.totalorder %v1856_v23, 0  ;;  %v1314_v7 = vmul.u32 %v1307_v2, %v1298_v29  ;;  %vm1374_vm0 = vcmp.gt.s32.totalorder %v1373_v9, 0  ;;  %v1148_v22 = vxor.u32 2147483648, %v1991_v42 }
 0x13b   :  { %v1226_v55 = vsel %vm1857_vm14, 0, %v1856_v23  ;;  %v1317_v5 = vadd.s32 1, %v3058_v41  ;;  %v1375_v56 = vsel %vm1374_vm0, %v1373_v9, 0  ;;  %v1152_v53 = vsel %vm1150_vm13, %v1151_v0, %v1991_v42 }
 0x13c   :  { %v1227_v46 = vsub.s32 32, %v1226_v55  ;;  %v1228_v18 = vshll.u32 %v3024_v43, %v1226_v55  ;;  %v1231_v4 = vsub.s32 4294967266, %v1226_v55  ;;  %v1149_v17 = vsel %vm1147_vm12, %v1989_v21, %v1148_v22 }
 0x13d   :  { %vm3079_vm1 = vcmp.le.f32.partialorder %v1155_v52, 0.7853982  ;;  %v1242_v13 = vsel %vm1157_vm11, %v1241_v19, %v3009_v30  ;;  %vm1316_vm15 = vc.u32 %v3071_v35, %v3057_v6  ;;  %v1153_v16 = vsel %vm1146_vm10, %v1149_v17, %v1152_v53 }
 0x13e   :  { %v1229_v44 = vshrl.u32 %v1211_v14, %v1227_v46  ;;  %v1232_v43 = vadd.s32 127, %v1231_v4  ;;  %v1318_v12 = vsel %vm1316_vm15, %v1317_v5, %v3058_v41  ;;  %v1154_v15 = vsel %vm1143_vm9, nan, %v1153_v16 }
 0x13f   :  { %v1319_v52 = vadd.s32 %v1318_v12, %v1314_v7  ;;  %v3092_v49 = vshrl.u32 %v1375_v56, 5  ;;  %v1377_v31 = vand.u32 31, %v1375_v56  ;;  %v1244_v30 = vsel %vm3079_vm1, 0, %v1242_v13  ;;  %1788 = vst [vmem:[#allocation5 + $0x48] sm:$0xff] %v1154_v15 }
 0x140   :  { %v1230_v20 = vor.u32 %v1229_v44, %v1228_v18  ;;  %v1233_v45 = vshll.u32 %v1232_v43, 23  ;;  %v1371_v2 = vor.u32 8388608, %v3065_v28  ;;  %v1248_v0 = vadd.s32 3, %v1244_v30 }
 0x141   :  { %v1320_v11 = vadd.s32 536870912, %v1319_v52  ;;  %v1378_v54 = vsub.s32 32, %v1377_v31  ;;  %v1380_v50 = vshll.u32 %v2065_v32, %v1377_v31  ;;  %v1383_v39 = vshll.u32 %v2066_v34, %v1377_v31 }
 0x142   :  { %v1234_v57 = vor.u32 4788187, %v1233_v45  ;;  %v1237_v27 = vcvt.s32.f32 %v1230_v20  ;;  %v1386_v26 = vshll.u32 %v2067_v36, %v1377_v31  ;;  %v1389_v51 = vshll.u32 %v2068_v38, %v1377_v31 }
 0x143   :  { %v1321_v37 = vshrl.u32 %v1320_v11, 30  ;;  %v1381_v24 = vshrl.u32 %v2066_v34, %v1378_v54  ;;  %v1384_v10 = vshrl.u32 %v2067_v36, %v1378_v54  ;;  %vm1395_vm2 = vcmp.lt.s32.totalorder %v3092_v49, 1 }
 0x144   :  { %v1235_v29 = vand.u32 2147483647, %v1234_v57  ;;  %v1387_v47 = vshrl.u32 %v2068_v38, %v1378_v54  ;;  %v1390_v41 = vshrl.u32 %v2069_v40, %v1378_v54  ;;  %v1392_v23 = vshll.u32 %v2069_v40, %v1377_v31 }
 0x145   :  { %v1322_v1 = vshll.u32 %v1321_v37, 30  ;;  %v1379_v28 = vshrl.u32 %v2065_v32, %v1378_v54  ;;  %v1382_v9 = vor.u32 %v1381_v24, %v1380_v50  ;;  %v1385_v21 = vor.u32 %v1384_v10, %v1383_v39 }
 0x146   :  { %v1238_v14 = vmul.f32 %v1237_v27, %v1235_v29  ;;  %v1388_v19 = vor.u32 %v1387_v47, %v1386_v26  ;;  %v1391_v33 = vor.u32 %v1390_v41, %v1389_v51  ;;  %v1393_v42 = vshrl.u32 %v2070_v48, %v1378_v54 }
 0x147   :  { %v3109_v7 = vsub.s32 %v1319_v52, %v1322_v1  ;;  %vm1398_vm3 = vcmp.lt.s32.totalorder %v3092_v49, 4  ;;  %vm1397_vm5 = vcmp.lt.s32.totalorder %v3092_v49, 3  ;;  %vm1396_vm6 = vcmp.lt.s32.totalorder %v3092_v49, 2 }
 0x148   :  { %v1239_v22 = vxor.u32 2147483648, %v1238_v14  ;;  %v1394_v55 = vor.u32 %v1393_v42, %v1392_v23  ;;  %v1400_v5 = vsel %vm1398_vm3, %v1388_v19, 2102212464  ;;  %v1403_v53 = vsel %vm1395_vm2, %v1382_v9, %v1385_v21 }
 0x149   :  { %v1325_v56 = vsub.s32 0, %v3109_v7  ;;  %v1411_v46 = vshll.u32 %v1371_v2, 8  ;;  %v1345_v4 = vsub.s32 4, %v1321_v37  ;;  %v1399_v17 = vsel %vm1395_vm2, %v1379_v28, %v1382_v9 }
 0x14a   :  { %v1240_v18 = vsel %vm1157_vm11, %v1239_v22, %v1238_v14  ;;  %v1404_v13 = vsel %vm1398_vm3, %v1391_v33, 920167782  ;;  %v1401_v43 = vsel %vm1397_vm5, %v1385_v21, %v1400_v5  ;;  %v1407_v52 = vsel %vm1395_vm2, %v1385_v21, %v1388_v19 }
 0x14b   :  { %v1243_v16 = vsel %vm3079_vm1, %v2112_v58, %v1240_v18  ;;  %v1859_v44 = vmin.u32 %v1325_v56, %v3109_v7  ;;  %v1405_v12 = vsel %vm1397_vm5, %v1388_v19, %v1404_v13  ;;  %v1408_v31 = vsel %vm1398_vm3, %v1394_v55, 1326507024 }
 0x14c   :  { %1992 = vcosq.f32 %v1243_v16  ;;  %v1406_v15 = vsel %vm1396_vm6, %v1403_v53, %v1405_v12  ;;  %vm1261_vm4 = vcmp.lt.s32.totalorder %v2114_v59, 0  ;;  %v1409_v45 = vsel %vm1397_vm5, %v1391_v33, %v1408_v31 }
 0x14d   :  { %1994 = vsinq.f32 %v1243_v16  ;;  %v1327_v8 = vclz %v1859_v44  ;;  %v1346_v20 = vsel %vm1261_vm4, %v1345_v4, %v1321_v37  ;;  %v1402_v54 = vsel %vm1396_vm6, %v1399_v17, %v1401_v43 }
 0x14e   :  { %v3144_v30 = vmul.u32.u64.low %v1411_v46, %v1406_v15  ;;  %v3145_v2 = vmul.u32.u64.high %v1411_v46, %v1406_v15, %v3144_v30  ;;  %v1410_v50 = vsel %vm1396_vm6, %v1407_v52, %v1409_v45  ;;  %v1470_v39 = vand.u32 2139095040, %v2118_v61 }
 0x14f   :  { %v1860_v11 = vadd.s32 4294967294, %v1327_v8  ;;  %v1249_v57 = vand.u32 3, %v1248_v0  ;;  %vm3154_vm7 = vcmp.le.f32.partialorder %v1259_v25, 0.7853982  ;;  %v1315_v37 = vadd.s32 %v3057_v6, %v3071_v35 }
 0x150   :  { %v3158_v26 = vmul.u32.u64.low %v1411_v46, %v1410_v50  ;;  %v3159_v51 = vmul.u32.u64.high %v1411_v46, %v1410_v50, %v3158_v26  ;;  %v1467_v24 = vand.u32 2147483647, %v2118_v61  ;;  %v1471_v49 = vshrl.u32 %v1470_v39, 23 }
 0x151   :  { %vm1861_vm8 = vcmp.lt.s32.totalorder %v1860_v11, 0  ;;  %v1348_v29 = vsel %vm3154_vm7, 0, %v1346_v20  ;;  %v1418_v47 = vmul.u32 %v1411_v46, %v1402_v54  ;;  %v1421_v25 = vadd.s32 1, %v3145_v2 }
 0x152   :  { %v1330_v10 = vsel %vm1861_vm8, 0, %v1860_v11  ;;  %v1866_v28 = vadd.s32 4294967169, %v1471_v49  ;;  %vm1251_vm9 = vcmp.eq.s32.totalorder %v1249_v57, 0  ;;  %vm1420_vm11 = vc.u32 %v3159_v51, %v3144_v30 }
 0x153   :  { %v1331_v41 = vsub.s32 32, %v1330_v10  ;;  %v1332_v23 = vshll.u32 %v3109_v7, %v1330_v10  ;;  %v1335_v1 = vsub.s32 4294967266, %v1330_v10  ;;  %v1422_v9 = vsel %vm1420_vm11, %v1421_v25, %v3145_v2 }
 0x154   :  { %v1477_v21 = vadd.s32 1, %v1866_v28  ;;  %vm1254_vm10 = vcmp.eq.s32.totalorder %v1249_v57, 2  ;;  %v1352_v19 = vadd.s32 3, %v1348_v29  ;;  %v1423_v33 = vadd.s32 %v1422_v9, %v1418_v47 }
 0x155   :  { %v1333_v6 = vshrl.u32 %v1315_v37, %v1331_v41  ;;  %v1336_v35 = vadd.s32 127, %v1335_v1  ;;  %v1474_v42 = vand.u32 8388607, %v1467_v24  ;;  %vm1250_vm13 = vcmp.lt.s32.totalorder %v1249_v57, 2 }
 0x156   :  { %v1993_v14 = vpop.eup %1992  ;;  %vm1478_vm12 = vcmp.gt.s32.totalorder %v1477_v21, 0  ;;  %v1424_v56 = vadd.s32 536870912, %v1423_v33  ;;  %vm1247_vm14 = vweird.f32 %v2112_v58  ;;  %v3176_v15 = vand.u32 3, %v1352_v19 }
 0x157   :  { %v1995_v0 = vpop.eup %1994  ;;  %v1255_v22 = vxor.u32 2147483648, %v1993_v14  ;;  %v1334_v7 = vor.u32 %v1333_v6, %v1332_v23  ;;  %v1337_v55 = vshll.u32 %v1336_v35, 23  ;;  %v1479_v53 = vsel %vm1478_vm12, %v1477_v21, 0 }
 0x158   :  { %v1252_v5 = vxor.u32 2147483648, %v1995_v0  ;;  %v3174_v13 = vshrl.u32 %v1424_v56, 30  ;;  %v1475_v16 = vor.u32 8388608, %v1474_v42  ;;  %v1481_v44 = vand.u32 31, %v1479_v53 }
 0x159   :  { %v1256_v46 = vsel %vm1254_vm10, %v1255_v22, %v1995_v0  ;;  %v1338_v18 = vor.u32 4788187, %v1337_v55  ;;  %v1341_v4 = vcvt.s32.f32 %v1334_v7  ;;  %v1574_v52 = vand.u32 2139095040, %v2120_v62 }
 0x15a   :  { %v1253_v17 = vsel %vm1251_vm9, %v1993_v14, %v1252_v5  ;;  %v1426_v8 = vshll.u32 %v3174_v13, 30  ;;  %v1480_v20 = vshrl.u32 %v1479_v53, 5  ;;  %v1482_v58 = vsub.s32 32, %v1481_v44 }
 0x15b   :  { %v1257_v43 = vsel %vm1250_vm13, %v1253_v17, %v1256_v46  ;;  %v1339_v12 = vand.u32 2147483647, %v1338_v18  ;;  %v1419_v2 = vadd.s32 %v3144_v30, %v3159_v51  ;;  %v1484_v11 = vshll.u32 %v2065_v32, %v1481_v44 }
 0x15c   :  { %v1258_v31 = vsel %vm1247_vm14, nan, %v1257_v43  ;;  %v1571_v54 = vand.u32 2147483647, %v2120_v62  ;;  %v3183_v50 = vsub.s32 %v1423_v33, %v1426_v8  ;;  %v1485_v39 = vshrl.u32 %v2066_v34, %v1482_v58 }
 0x15d   :  { %v1342_v45 = vmul.f32 %v1341_v4, %v1339_v12  ;;  %1789 = vst [vmem:[#allocation5 + $0x50] sm:$0xff] %v1258_v31  ;;  %v1487_v57 = vshll.u32 %v2066_v34, %v1481_v44  ;;  %v3187_v26 = vshll.u32 %v1475_v16, 8  ;;  %v1488_v49 = vshrl.u32 %v2067_v36, %v1482_v58 }
 0x15e   :  { %v1490_v10 = vshll.u32 %v2067_v36, %v1481_v44  ;;  %v1491_v30 = vshrl.u32 %v2068_v38, %v1482_v58  ;;  %v1429_v51 = vsub.s32 0, %v3183_v50  ;;  %v1493_v29 = vshll.u32 %v2068_v38, %v1481_v44 }
 0x15f   :  { %v1343_v37 = vxor.u32 2147483648, %v1342_v45  ;;  %vm1499_vm0 = vcmp.lt.s32.totalorder %v1480_v20, 1  ;;  %v1575_v47 = vshrl.u32 %v1574_v52, 23  ;;  %v1483_v41 = vshrl.u32 %v2065_v32, %v1482_v58 }
 0x160   :  { %v1486_v23 = vor.u32 %v1485_v39, %v1484_v11  ;;  %v1494_v1 = vshrl.u32 %v2069_v40, %v1482_v58  ;;  %v1863_v6 = vmin.u32 %v1429_v51, %v3183_v50  ;;  %v1489_v35 = vor.u32 %v1488_v49, %v1487_v57 }
 0x161   :  { %v1344_v25 = vsel %vm1261_vm4, %v1343_v37, %v1342_v45  ;;  %v1496_v9 = vshll.u32 %v2069_v40, %v1481_v44  ;;  %v1492_v21 = vor.u32 %v1491_v30, %v1490_v10  ;;  %v1497_v19 = vshrl.u32 %v2070_v48, %v1482_v58 }
 0x162   :  { %v1347_v28 = vsel %vm3154_vm7, %v2114_v59, %v1344_v25  ;;  %v1495_v14 = vor.u32 %v1494_v1, %v1493_v29  ;;  %vm1365_vm1 = vcmp.lt.s32.totalorder %v2116_v60, 0  ;;  %v1431_v33 = vclz %v1863_v6 }
 0x163   :  { %1996 = vcosq.f32 %v1347_v28  ;;  %vm1501_vm15 = vcmp.lt.s32.totalorder %v1480_v20, 3  ;;  %v1870_v42 = vadd.s32 4294967169, %v1575_v47  ;;  %v1498_v0 = vor.u32 %v1497_v19, %v1496_v9 }
 0x164   :  { %1998 = vsinq.f32 %v1347_v28  ;;  %vm1500_vm2 = vcmp.lt.s32.totalorder %v1480_v20, 2  ;;  %vm1502_vm3 = vcmp.lt.s32.totalorder %v1480_v20, 4  ;;  %v1503_v27 = vsel %vm1499_vm0, %v1483_v41, %v1486_v23 }
 0x165   :  { %v1864_v22 = vadd.s32 4294967294, %v1431_v33  ;;  %v1504_v7 = vsel %vm1502_vm3, %v1492_v21, 2102212464  ;;  %v1507_v55 = vsel %vm1499_vm0, %v1486_v23, %v1489_v35  ;;  %v1508_v5 = vsel %vm1502_vm3, %v1495_v14, 920167782 }
 0x166   :  { %v1505_v56 = vsel %vm1501_vm15, %v1489_v35, %v1504_v7  ;;  %v1509_v53 = vsel %vm1501_vm15, %v1492_v21, %v1508_v5  ;;  %v1511_v46 = vsel %vm1499_vm0, %v1489_v35, %v1492_v21  ;;  %v1512_v18 = vsel %vm1502_vm3, %v1498_v0, 1326507024 }
 0x167   :  { %vm1351_vm5 = vweird.f32 %v2114_v59  ;;  %vm1865_vm6 = vcmp.lt.s32.totalorder %v1864_v22, 0  ;;  %v1449_v4 = vsub.s32 4, %v3174_v13  ;;  %v1510_v17 = vsel %vm1500_vm2, %v1507_v55, %v1509_v53 }
 0x168   :  { %v1513_v16 = vsel %vm1501_vm15, %v1495_v14, %v1512_v18  ;;  %v1434_v44 = vsel %vm1865_vm6, 0, %v1864_v22  ;;  %v3216_v12 = vmul.u32.u64.low %v3187_v26, %v1510_v17  ;;  %v3217_v52 = vmul.u32.u64.high %v3187_v26, %v1510_v17, %v3216_v12 }
 0x169   :  { %v1514_v43 = vsel %vm1500_vm2, %v1511_v46, %v1513_v16  ;;  %v1435_v31 = vsub.s32 32, %v1434_v44  ;;  %v1436_v8 = vshll.u32 %v3183_v50, %v1434_v44  ;;  %v1439_v58 = vsub.s32 4294967266, %v1434_v44 }
 0x16a   :  { %v1506_v45 = vsel %vm1500_vm2, %v1503_v27, %v1505_v56  ;;  %vm1355_vm4 = vcmp.eq.s32.totalorder %v3176_v15, 0  ;;  %v3224_v11 = vmul.u32.u64.low %v3187_v26, %v1514_v43  ;;  %v3225_v39 = vmul.u32.u64.high %v3187_v26, %v1514_v43, %v3224_v11 }
 0x16b   :  { %v1581_v57 = vadd.s32 1, %v1870_v42  ;;  %vm1358_vm7 = vcmp.eq.s32.totalorder %v3176_v15, 2  ;;  %v1437_v37 = vshrl.u32 %v1419_v2, %v1435_v31  ;;  %v1440_v49 = vadd.s32 127, %v1439_v58 }
 0x16c   :  { %v3230_v10 = vand.u32 8388607, %v1571_v54  ;;  %v1450_v20 = vsel %vm1365_vm1, %v1449_v4, %v3174_v13  ;;  %v1522_v50 = vmul.u32 %v3187_v26, %v1506_v45  ;;  %v1525_v51 = vadd.s32 1, %v3217_v52 }
 0x16d   :  { %v1997_v30 = vpop.eup %1996  ;;  %vm1582_vm8 = vcmp.gt.s32.totalorder %v1581_v57, 0  ;;  %v1438_v25 = vor.u32 %v1437_v37, %v1436_v8  ;;  %v1441_v41 = vshll.u32 %v1440_v49, 23  ;;  %vm1354_vm9 = vcmp.lt.s32.totalorder %v3176_v15, 2 }
 0x16e   :  { %v1999_v29 = vpop.eup %1998  ;;  %v1359_v47 = vxor.u32 2147483648, %v1997_v30  ;;  %v1583_v2 = vsel %vm1582_vm8, %v1581_v57, 0  ;;  %vm3240_vm11 = vcmp.le.f32.partialorder %v1363_v3, 0.7853982  ;;  %vm1524_vm10 = vc.u32 %v3225_v39, %v3216_v12 }
 0x16f   :  { %v1356_v23 = vxor.u32 2147483648, %v1999_v29  ;;  %v1442_v26 = vor.u32 4788187, %v1441_v41  ;;  %v1445_v28 = vcvt.s32.f32 %v1438_v25  ;;  %v1526_v6 = vsel %vm1524_vm10, %v1525_v51, %v3217_v52 }
 0x170   :  { %v1360_v13 = vsel %vm1358_vm7, %v1359_v47, %v1999_v29  ;;  %v1452_v9 = vsel %vm3240_vm11, 0, %v1450_v20  ;;  %v1527_v3 = vadd.s32 %v1526_v6, %v1522_v50  ;;  %v1585_v21 = vand.u32 31, %v1583_v2 }
 0x171   :  { %v1357_v35 = vsel %vm1355_vm4, %v1997_v30, %v1356_v23  ;;  %v1443_v19 = vand.u32 2147483647, %v1442_v26  ;;  %v1579_v33 = vor.u32 8388608, %v3230_v10  ;;  %v1584_v42 = vshrl.u32 %v1583_v2, 5 }
 0x172   :  { %v1361_v14 = vsel %vm1354_vm9, %v1357_v35, %v1360_v13  ;;  %v1528_v27 = vadd.s32 536870912, %v1527_v3  ;;  %v1586_v22 = vsub.s32 32, %v1585_v21  ;;  %v1588_v7 = vshll.u32 %v2065_v32, %v1585_v21 }
 0x173   :  { %v1362_v0 = vsel %vm1351_vm5, nan, %v1361_v14  ;;  %v1446_v55 = vmul.f32 %v1445_v28, %v1443_v19  ;;  %v1456_v15 = vadd.s32 3, %v1452_v9  ;;  %v1591_v5 = vshll.u32 %v2066_v34, %v1585_v21 }
 0x174   :  { %v1597_v56 = vshll.u32 %v2068_v38, %v1585_v21  ;;  %1790 = vst [vmem:[#allocation5 + $0x58] sm:$0xff] %v1362_v0  ;;  %v3259_v53 = vshrl.u32 %v1528_v27, 30  ;;  %v1589_v46 = vshrl.u32 %v2066_v34, %v1586_v22  ;;  %v1592_v18 = vshrl.u32 %v2067_v36, %v1586_v22 }
 0x175   :  { %v1594_v59 = vshll.u32 %v2067_v36, %v1585_v21  ;;  %v1447_v4 = vxor.u32 2147483648, %v1446_v55  ;;  %v1595_v17 = vshrl.u32 %v2068_v38, %v1586_v22  ;;  %v1598_v16 = vshrl.u32 %v2069_v40, %v1586_v22 }
 0x176   :  { %v1600_v44 = vshll.u32 %v2069_v40, %v1585_v21  ;;  %v1530_v43 = vshll.u32 %v3259_v53, 30  ;;  %v1587_v52 = vshrl.u32 %v2065_v32, %v1586_v22  ;;  %v1590_v31 = vor.u32 %v1589_v46, %v1588_v7 }
 0x177   :  { %vm1603_vm12 = vcmp.lt.s32.totalorder %v1584_v42, 1  ;;  %v1448_v8 = vsel %vm1365_vm1, %v1447_v4, %v1446_v55  ;;  %v1593_v58 = vor.u32 %v1592_v18, %v1591_v5  ;;  %v1599_v45 = vor.u32 %v1598_v16, %v1597_v56 }
 0x178   :  { %v1601_v11 = vshrl.u32 %v2070_v48, %v1586_v22  ;;  %v1451_v57 = vsel %vm3240_vm11, %v2116_v60, %v1448_v8  ;;  %v3275_v37 = vsub.s32 %v1527_v3, %v1530_v43  ;;  %v1596_v49 = vor.u32 %v1595_v17, %v1594_v59 }
 0x179   :  { %vm1606_vm13 = vcmp.lt.s32.totalorder %v1584_v42, 4  ;;  %2000 = vcosq.f32 %v1451_v57  ;;  %vm1605_vm14 = vcmp.lt.s32.totalorder %v1584_v42, 3  ;;  %vm1604_vm0 = vcmp.lt.s32.totalorder %v1584_v42, 2 }
 0x17a   :  { %v1602_v10 = vor.u32 %v1601_v11, %v1600_v44  ;;  %2002 = vsinq.f32 %v1451_v57  ;;  %v1533_v30 = vsub.s32 0, %v3275_v37  ;;  %v1608_v20 = vsel %vm1606_vm13, %v1596_v49, 2102212464 }
 0x17b   :  { %v1611_v50 = vsel %vm1603_vm12, %v1590_v31, %v1593_v58  ;;  %v1612_v51 = vsel %vm1606_vm13, %v1599_v45, 920167782  ;;  %v1619_v29 = vshll.u32 %v1579_v33, 8  ;;  %v1678_v47 = vand.u32 2139095040, %v2122_v63 }
 0x17c   :  { %v1457_v25 = vand.u32 3, %v1456_v15  ;;  %v1867_v41 = vmin.u32 %v1533_v30, %v3275_v37  ;;  %v1607_v2 = vsel %vm1603_vm12, %v1587_v52, %v1590_v31  ;;  %v1613_v23 = vsel %vm1605_vm14, %v1596_v49, %v1612_v51 }
 0x17d   :  { %v1609_v1 = vsel %vm1605_vm14, %v1593_v58, %v1608_v20  ;;  %v1614_v13 = vsel %vm1604_vm0, %v1611_v50, %v1613_v23  ;;  %v1615_v26 = vsel %vm1603_vm12, %v1593_v58, %v1596_v49  ;;  %v1616_v28 = vsel %vm1606_vm13, %v1602_v10, 1326507024 }
 0x17e   :  { %vm1455_vm1 = vweird.f32 %v2116_v60  ;;  %v1535_v6 = vclz %v1867_v41  ;;  %v1617_v35 = vsel %vm1605_vm14, %v1599_v45, %v1616_v28  ;;  %v1679_v21 = vshrl.u32 %v1678_v47, 23 }
 0x17f   :  { %v3291_v9 = vmul.u32.u64.low %v1619_v29, %v1614_v13  ;;  %v3292_v3 = vmul.u32.u64.high %v1619_v29, %v1614_v13, %v3291_v9  ;;  %vm1458_vm15 = vcmp.lt.s32.totalorder %v1457_v25, 2  ;;  %v1610_v19 = vsel %vm1604_vm0, %v1607_v2, %v1609_v1 }
 0x180   :  { %v1868_v14 = vadd.s32 4294967294, %v1535_v6  ;;  %v1618_v33 = vsel %vm1604_vm0, %v1615_v26, %v1617_v35  ;;  %vm1459_vm2 = vcmp.eq.s32.totalorder %v1457_v25, 0  ;;  %v1874_v22 = vadd.s32 4294967169, %v1679_v21 }
 0x181   :  { %v3297_v0 = vmul.u32.u64.low %v1619_v29, %v1618_v33  ;;  %v3298_v27 = vmul.u32.u64.high %v1619_v29, %v1618_v33, %v3297_v0  ;;  %vm1462_vm3 = vcmp.eq.s32.totalorder %v1457_v25, 2  ;;  %v1523_v7 = vadd.s32 %v3216_v12, %v3225_v39 }
 0x182   :  { %vm1869_vm5 = vcmp.lt.s32.totalorder %v1868_v14, 0  ;;  %v1675_v55 = vand.u32 2147483647, %v2122_v63  ;;  %v1626_v56 = vmul.u32 %v1619_v29, %v1610_v19  ;;  %v1629_v46 = vadd.s32 1, %v3292_v3 }
 0x183   :  { %v2001_v15 = vpop.eup %2000  ;;  %v1538_v5 = vsel %vm1869_vm5, 0, %v1868_v14  ;;  %v1685_v18 = vadd.s32 1, %v1874_v22  ;;  %v1553_v43 = vsub.s32 4, %v3259_v53  ;;  %vm1628_vm6 = vc.u32 %v3298_v27, %v3291_v9 }
 0x184   :  { %v2003_v42 = vpop.eup %2002  ;;  %v1463_v59 = vxor.u32 2147483648, %v2001_v15  ;;  %v1539_v4 = vsub.s32 32, %v1538_v5  ;;  %v1540_v17 = vshll.u32 %v3275_v37, %v1538_v5  ;;  %v1543_v16 = vsub.s32 4294967266, %v1538_v5 }
 0x185   :  { %v1460_v44 = vxor.u32 2147483648, %v2003_v42  ;;  %vm1686_vm4 = vcmp.gt.s32.totalorder %v1685_v18, 0  ;;  %v1630_v31 = vsel %vm1628_vm6, %v1629_v46, %v3292_v3  ;;  %v1682_v45 = vand.u32 8388607, %v1675_v55 }
 0x186   :  { %v1464_v12 = vsel %vm1462_vm3, %v1463_v59, %v2003_v42  ;;  %v1541_v39 = vshrl.u32 %v1523_v7, %v1539_v4  ;;  %v1544_v52 = vadd.s32 127, %v1543_v16  ;;  %v1631_v58 = vadd.s32 %v1630_v31, %v1626_v56 }
 0x187   :  { %v1461_v8 = vsel %vm1459_vm2, %v2001_v15, %v1460_v44  ;;  %v1687_v11 = vsel %vm1686_vm4, %v1685_v18, 0  ;;  %vm1469_vm7 = vcmp.lt.s32.totalorder %v2118_v61, 0  ;;  %vm3319_vm8 = vcmp.le.f32.partialorder %v1467_v24, 0.7853982 }
 0x188   :  { %v1465_v57 = vsel %vm1458_vm15, %v1461_v8, %v1464_v12  ;;  %v1542_v37 = vor.u32 %v1541_v39, %v1540_v17  ;;  %v1545_v49 = vshll.u32 %v1544_v52, 23  ;;  %v1632_v30 = vadd.s32 536870912, %v1631_v58 }
 0x189   :  { %v1466_v10 = vsel %vm1455_vm1, nan, %v1465_v57  ;;  %v1689_v20 = vand.u32 31, %v1687_v11  ;;  %v1554_v47 = vsel %vm1469_vm7, %v1553_v43, %v3259_v53  ;;  %v1683_v60 = vor.u32 8388608, %v1682_v45 }
 0x18a   :  { %v1546_v51 = vor.u32 4788187, %v1545_v49  ;;  %v1549_v29 = vcvt.s32.f32 %v1542_v37  ;;  %1791 = vst [vmem:[#allocation5 + $0x60] sm:$0xff] %v1466_v10  ;;  %v3326_v25 = vshrl.u32 %v1632_v30, 30  ;;  %v1688_v41 = vshrl.u32 %v1687_v11, 5 }
 0x18b   :  { %v1690_v2 = vsub.s32 32, %v1689_v20  ;;  %v1692_v1 = vshll.u32 %v2065_v32, %v1689_v20  ;;  %v1695_v24 = vshll.u32 %v2066_v34, %v1689_v20  ;;  %v1698_v13 = vshll.u32 %v2067_v36, %v1689_v20 }
 0x18c   :  { %v1547_v23 = vand.u32 2147483647, %v1546_v51  ;;  %v1634_v26 = vshll.u32 %v3326_v25, 30  ;;  %v1701_v6 = vshll.u32 %v2068_v38, %v1689_v20  ;;  %v1704_v53 = vshll.u32 %v2069_v40, %v1689_v20 }
 0x18d   :  { %v1693_v28 = vshrl.u32 %v2066_v34, %v1690_v2  ;;  %v1696_v3 = vshrl.u32 %v2067_v36, %v1690_v2  ;;  %v1699_v21 = vshrl.u32 %v2068_v38, %v1690_v2  ;;  %v1702_v14 = vshrl.u32 %v2069_v40, %v1690_v2 }
 0x18e   :  { %v1550_v35 = vmul.f32 %v1549_v29, %v1547_v23  ;;  %v1556_v19 = vsel %vm3319_vm8, 0, %v1554_v47  ;;  %v1635_v33 = vsub.s32 %v1631_v58, %v1634_v26  ;;  %v1705_v0 = vshrl.u32 %v2070_v48, %v1690_v2 }
 0x18f   :  { %v1694_v7 = vor.u32 %v1693_v28, %v1692_v1  ;;  %v1697_v34 = vor.u32 %v1696_v3, %v1695_v24  ;;  %v1723_v15 = vshll.u32 %v1683_v60, 8  ;;  %v1700_v56 = vor.u32 %v1699_v21, %v1698_v13 }
 0x190   :  { %v1551_v22 = vxor.u32 2147483648, %v1550_v35  ;;  %v1637_v5 = vsub.s32 0, %v1635_v33  ;;  %v1703_v46 = vor.u32 %v1702_v14, %v1701_v6  ;;  %vm1707_vm9 = vcmp.lt.s32.totalorder %v1688_v41, 1 }
 0x191   :  { %v1691_v38 = vshrl.u32 %v2065_v32, %v1690_v2  ;;  %v1706_v40 = vor.u32 %v1705_v0, %v1704_v53  ;;  %vm1710_vm11 = vcmp.lt.s32.totalorder %v1688_v41, 4  ;;  %vm1709_vm10 = vcmp.lt.s32.totalorder %v1688_v41, 3 }
 0x192   :  { %v1552_v36 = vsel %vm1469_vm7, %v1551_v22, %v1550_v35  ;;  %v1871_v48 = vmin.u32 %v1637_v5, %v1635_v33  ;;  %v1712_v42 = vsel %vm1710_vm11, %v1700_v56, 2102212464  ;;  %vm1708_vm12 = vcmp.lt.s32.totalorder %v1688_v41, 2 }
 0x193   :  { %v1555_v18 = vsel %vm3319_vm8, %v2118_v61, %v1552_v36  ;;  %v1715_v59 = vsel %vm1707_vm9, %v1694_v7, %v1697_v34  ;;  %v1716_v4 = vsel %vm1710_vm11, %v1703_v46, 920167782  ;;  %v1560_v17 = vadd.s32 3, %v1556_v19 }
 0x194   :  { %2004 = vcosq.f32 %v1555_v18  ;;  %v1639_v16 = vclz %v1871_v48  ;;  %v1711_v32 = vsel %vm1707_vm9, %v1691_v38, %v1694_v7  ;;  %v1713_v44 = vsel %vm1709_vm10, %v1697_v34, %v1712_v42 }
 0x195   :  { %2006 = vsinq.f32 %v1555_v18  ;;  %v1717_v43 = vsel %vm1709_vm10, %v1700_v56, %v1716_v4  ;;  %v1719_v12 = vsel %vm1707_vm9, %v1697_v34, %v1700_v56  ;;  %v1720_v31 = vsel %vm1710_vm11, %v1706_v40, 1326507024 }
 0x196   :  { %v1872_v39 = vadd.s32 4294967294, %v1639_v16  ;;  %v1718_v52 = vsel %vm1708_vm12, %v1715_v59, %v1717_v43  ;;  %v1721_v8 = vsel %vm1709_vm10, %v1703_v46, %v1720_v31  ;;  %v1627_v11 = vadd.s32 %v3291_v9, %v3298_v27 }
 0x197   :  { %v3357_v58 = vmul.u32.u64.low %v1723_v15, %v1718_v52  ;;  %v3358_v45 = vmul.u32.u64.high %v1723_v15, %v1718_v52, %v3357_v58  ;;  %v1714_v57 = vsel %vm1708_vm12, %v1711_v32, %v1713_v44  ;;  %v1722_v37 = vsel %vm1708_vm12, %v1719_v12, %v1721_v8 }
 0x198   :  { %vm1873_vm13 = vcmp.lt.s32.totalorder %v1872_v39, 0  ;;  %v1561_v49 = vand.u32 3, %v1560_v17  ;;  %v3364_v30 = vmul.u32.u64.low %v1723_v15, %v1722_v37  ;;  %v3365_v20 = vmul.u32.u64.high %v1723_v15, %v1722_v37, %v3364_v30 }
 0x199   :  { %v1642_v10 = vsel %vm1873_vm13, 0, %v1872_v39  ;;  %v1730_v47 = vmul.u32 %v1723_v15, %v1714_v57  ;;  %v1733_v60 = vadd.s32 1, %v3358_v45  ;;  %vm1559_vm2 = vweird.f32 %v2118_v61 }
 0x19a   :  { %v1643_v50 = vsub.s32 32, %v1642_v10  ;;  %v1644_v51 = vshll.u32 %v1635_v33, %v1642_v10  ;;  %v1647_v29 = vsub.s32 4294967266, %v1642_v10  ;;  %vm1563_vm14 = vcmp.eq.s32.totalorder %v1561_v49, 0 }
 0x19b   :  { %vm1566_vm0 = vcmp.eq.s32.totalorder %v1561_v49, 2  ;;  %vm1732_vm1 = vc.u32 %v3365_v20, %v3357_v58  ;;  %vm1562_vm15 = vcmp.lt.s32.totalorder %v1561_v49, 2  ;;  %v1657_v33 = vsub.s32 4, %v3326_v25 }
 0x19c   :  { %v1645_v2 = vshrl.u32 %v1627_v11, %v1643_v50  ;;  %v1648_v23 = vadd.s32 127, %v1647_v29  ;;  %v1734_v13 = vsel %vm1732_vm1, %v1733_v60, %v3358_v45  ;;  %vm1573_vm3 = vcmp.lt.s32.totalorder %v2120_v62, 0 }
 0x19d   :  { %v1735_v28 = vadd.s32 %v1734_v13, %v1730_v47  ;;  %vm1572_vm5 = vcmp.le.f32.partialorder %v1571_v54, 0.7853982  ;;  %v1658_v15 = vsel %vm1573_vm3, %v1657_v33, %v3326_v25  ;;  %v1731_v4 = vadd.s32 %v3357_v58, %v3365_v20 }
 0x19e   :  { %v2005_v1 = vpop.eup %2004  ;;  %v1646_v41 = vor.u32 %v1645_v2, %v1644_v51  ;;  %v1649_v24 = vshll.u32 %v1648_v23, 23  ;;  %v1660_v36 = vsel %vm1572_vm5, 0, %v1658_v15  ;;  %vm1663_vm9 = vweird.f32 %v2120_v62 }
 0x19f   :  { %v2007_v9 = vpop.eup %2006  ;;  %v1567_v27 = vxor.u32 2147483648, %v2005_v1  ;;  %v1736_v21 = vadd.s32 536870912, %v1735_v28  ;;  %v1664_v18 = vadd.s32 3, %v1660_v36  ;;  %vm1677_vm11 = vcmp.lt.s32.totalorder %v2122_v63, 0 }
 0x1a0   :  { %v1564_v26 = vxor.u32 2147483648, %v2007_v9  ;;  %v1650_v53 = vor.u32 4788187, %v1649_v24  ;;  %v1653_v35 = vcvt.s32.f32 %v1646_v41  ;;  %vm1676_vm10 = vcmp.le.f32.partialorder %v1675_v55, 0.7853982 }
 0x1a1   :  { %v1568_v6 = vsel %vm1566_vm0, %v1567_v27, %v2007_v9  ;;  %v1737_v22 = vshrl.u32 %v1736_v21, 30  ;;  %v1665_v59 = vand.u32 3, %v1664_v18  ;;  %vm1767_vm0 = vweird.f32 %v2122_v63 }
 0x1a2   :  { %v1565_v3 = vsel %vm1563_vm14, %v2005_v1, %v1564_v26  ;;  %v1651_v19 = vand.u32 2147483647, %v1650_v53 }
 0x1a3   :  { %v1569_v14 = vsel %vm1562_vm15, %v1565_v3, %v1568_v6  ;;  %v1738_v34 = vshll.u32 %v1737_v22, 30  ;;  %vm1670_vm4 = vcmp.eq.s32.totalorder %v1665_v59, 2  ;;  %vm1667_vm7 = vcmp.eq.s32.totalorder %v1665_v59, 0 }
 0x1a4   :  { %v1570_v0 = vsel %vm1559_vm2, nan, %v1569_v14  ;;  %v1654_v7 = vmul.f32 %v1653_v35, %v1651_v19  ;;  %vm1666_vm8 = vcmp.lt.s32.totalorder %v1665_v59, 2  ;;  %v1761_v30 = vsub.s32 4, %v1737_v22 }
 0x1a5   :  { %1792 = vst [vmem:[#allocation5 + $0x68] sm:$0xff] %v1570_v0  ;;  %v1739_v5 = vsub.s32 %v1735_v28, %v1738_v34 }
 0x1a6   :  { %v1655_v61 = vxor.u32 2147483648, %v1654_v7  ;;  %v1762_v51 = vsel %vm1677_vm11, %v1761_v30, %v1737_v22 }
 0x1a7   :  { %v1741_v38 = vsub.s32 0, %v1739_v5  ;;  %v1764_v47 = vsel %vm1676_vm10, 0, %v1762_v51 }
 0x1a8   :  { %v1656_v56 = vsel %vm1573_vm3, %v1655_v61, %v1654_v7  ;;  %v1768_v60 = vadd.s32 3, %v1764_v47 }
 0x1a9   :  { %v1659_v46 = vsel %vm1572_vm5, %v2120_v62, %v1656_v56  ;;  %v1875_v40 = vmin.u32 %v1741_v38, %v1739_v5 }
 0x1aa   :  { %2008 = vcosq.f32 %v1659_v46  ;;  %v1769_v2 = vand.u32 3, %v1768_v60 }
 0x1ab   :  { %2010 = vsinq.f32 %v1659_v46  ;;  %v1743_v48 = vclz %v1875_v40 }
 0x1ac   :  { %vm1774_vm12 = vcmp.eq.s32.totalorder %v1769_v2, 2  ;;  %vm1771_vm13 = vcmp.eq.s32.totalorder %v1769_v2, 0  ;;  %vm1770_vm14 = vcmp.lt.s32.totalorder %v1769_v2, 2 }
 0x1ad   :  { %v1876_v42 = vadd.s32 4294967294, %v1743_v48 }
 0x1af   :  { %vm1877_vm6 = vcmp.lt.s32.totalorder %v1876_v42, 0 }
 0x1b0   :  { %v1746_v54 = vsel %vm1877_vm6, 0, %v1876_v42 }
 0x1b1   :  { %v1747_v17 = vsub.s32 32, %v1746_v54  ;;  %v1748_v16 = vshll.u32 %v1739_v5, %v1746_v54  ;;  %v1751_v25 = vsub.s32 4294967266, %v1746_v54 }
 0x1b3   :  { %v1749_v12 = vshrl.u32 %v1731_v4, %v1747_v17  ;;  %v1752_v39 = vadd.s32 127, %v1751_v25 }
 0x1b4   :  { %v2009_v32 = vpop.eup %2008 }
 0x1b5   :  { %v2011_v44 = vpop.eup %2010  ;;  %v1671_v43 = vxor.u32 2147483648, %v2009_v32  ;;  %v1750_v8 = vor.u32 %v1749_v12, %v1748_v16  ;;  %v1753_v45 = vshll.u32 %v1752_v39, 23 }
 0x1b6   :  { %v1668_v52 = vxor.u32 2147483648, %v2011_v44 }
 0x1b7   :  { %v1672_v31 = vsel %vm1670_vm4, %v1671_v43, %v2011_v44  ;;  %v1754_v57 = vor.u32 4788187, %v1753_v45  ;;  %v1757_v37 = vcvt.s32.f32 %v1750_v8 }
 0x1b8   :  { %v1669_v58 = vsel %vm1667_vm7, %v2009_v32, %v1668_v52 }
 0x1b9   :  { %v1673_v11 = vsel %vm1666_vm8, %v1669_v58, %v1672_v31  ;;  %v1755_v10 = vand.u32 2147483647, %v1754_v57 }
 0x1ba   :  { %v1674_v49 = vsel %vm1663_vm9, nan, %v1673_v11 }
 0x1bb   :  { %1793 = vst [vmem:[#allocation5 + $0x70] sm:$0xff] %v1674_v49  ;;  %v1758_v20 = vmul.f32 %v1757_v37, %v1755_v10 }
 0x1bd   :  { %v1759_v50 = vxor.u32 2147483648, %v1758_v20 }
 0x1bf   :  { %v1760_v62 = vsel %vm1677_vm11, %v1759_v50, %v1758_v20 }
 0x1c0   :  { %v1763_v29 = vsel %vm1676_vm10, %v2122_v63, %v1760_v62 }
 0x1c1   :  { %2012 = vcosq.f32 %v1763_v29 }
 0x1c2   :  { %2014 = vsinq.f32 %v1763_v29 }
 0x1cb   :  { %v2013_v23 = vpop.eup %2012 }
 0x1cc   :  { %v2015_v1 = vpop.eup %2014  ;;  %v1775_v9 = vxor.u32 2147483648, %v2013_v23 }
 0x1cd   :  { %v1772_v27 = vxor.u32 2147483648, %v2015_v1 }
 0x1ce   :  { %v1776_v55 = vsel %vm1774_vm12, %v1775_v9, %v2015_v1 }
 0x1cf   :  { %v1773_v41 = vsel %vm1771_vm13, %v2013_v23, %v1772_v27 }
 0x1d0   :  { %v1777_v24 = vsel %vm1770_vm14, %v1773_v41, %v1776_v55 }
 0x1d1   :  { %v1778_v13 = vsel %vm1767_vm0, nan, %v1777_v24 }
 0x1d2   :  { %1794 = vst [vmem:[#allocation5 + $0x78] sm:$0xff] %v1778_v13 }
 0x1d3   :  { %2049 = shalt.err (!%p2046_p12)
}
 0x1d4   :  { %s2050_s22 = scalar_lea.hbm %s3397_s1, 2048 }
 0x1d5   :  { %p2051_p13 = scmp.ne.s32.totalorder %s3397_s1, %s2050_s22  ;;  %p2054_p0 = scmp.lt.u32.totalorder %s2050_s22, %s3397_s1 }
 0x1d7   :  { %p2056_p1 = pnand %p2054_p0, %p2051_p13 }
 0x1d9   :  { %2059 = shalt.err (!%p2056_p1)
}
 0x1da   :  { %s2072_s27 = smov 128   ;;  %s2073_s28 = smov 8  }
 0x1db   :  { %1806 = dma.vmem_to_hbm [thread:$0]  %s1801_s18, 2048, %s3397_s1, [#allocation4], %s2072_s27, %s2072_s27, %s2073_s28  }
 0x1dc   :  { %2062 = dma.done.wait [#allocation4], 2048  }
 0x1dd   :  { %2063 = vsyncadd [#allocation4], 4294965248 }
 0x1de   :  { %1810 = vsyncpa [#allocation3], 1 }
 0x1df   :  { %1811 = vsyncpa [#allocation4], 1 }

</bundles_post_ra>
